<compile_context>
chip_gen: v7x
topology: tpu7x:2x2x1
jax: 0.10.0
libtpu: 0.0.40
codegen_flags: <defaults>
</compile_context>

<pallas_src>
import math

import jax
import jax.numpy as jnp
from jax import lax
from jax.experimental import pallas as pl
from jax.experimental.pallas import tpu as pltpu

# ------------------------------- config --------------------------------------
LATENT_SIZE = 16
TEMB_SIZE = 32
T_STEPS = 100
ONEHOT_T = 128                   # T padded to one full lane tile
HIDDEN = (32, 64, 128)
H0 = HIDDEN[0]
N_ENC = len(HIDDEN) - 1          # encoder layers == decoder layers == t_fc count
BN_EPS = 1e-5
BATCH = 8                        # rows per BatchNorm group (one torch forward)
GROUPS = 4                       # independent groups stacked into one call

# -------------------------- packed-parameter layout ---------------------------
# One weight slab: all 2-D weights (plus the padded embedding table) stacked
# along the sublane axis, lane dim padded to 128.  Offsets are static Python
# ints -> static ref slices in-kernel.


def _build_weight_layout():
    lay = [("head_w", LATENT_SIZE, H0)]
    now = H0
    for i, size in enumerate(HIDDEN[1:]):
        lay.append((f"enc{i}_w", now, size))
        now = size
    lay.append(("tfc_w", TEMB_SIZE, sum(HIDDEN[:-1])))       # fused t_fc weights
    for i, size in enumerate(reversed(HIDDEN[:-1])):
        lay.append((f"dec{i}_w", now, size))
        now = size
    lay.append(("tail_fc1_w", H0, H0))
    lay.append(("tail_fc2_w", H0, LATENT_SIZE))
    lay.append(("emb", ONEHOT_T, TEMB_SIZE))                 # padded embedding
    return lay


W_LAYOUT = _build_weight_layout()
W_SLOTS = {}
_off = 0
for _name, _k, _n in W_LAYOUT:
    W_SLOTS[_name] = (_off, _k, _n)
    _off += _k
W_ROWS = _off                                    # 528 rows (multiple of 8)
W_COLS = 128

# Vector slab: one 128-lane row per BN gamma/beta and per linear bias.


def _build_vector_layout():
    lay = [("head_b", H0)]
    now = H0
    for i, size in enumerate(HIDDEN[1:]):
        lay += [(f"enc{i}_g", now), (f"enc{i}_beta", now), (f"enc{i}_b", size)]
        now = size
    for i, size in enumerate(reversed(HIDDEN[:-1])):
        lay += [(f"dec{i}_g", now), (f"dec{i}_beta", now), (f"dec{i}_b", size)]
        now = size
    lay += [("tail_bn1_g", H0), ("tail_bn1_beta", H0), ("tail_fc1_b", H0),
            ("tail_bn2_g", H0), ("tail_bn2_beta", H0), ("tail_fc2_b", LATENT_SIZE)]
    return lay


V_LAYOUT = _build_vector_layout()
V_SLOTS = {name: (row, c) for row, (name, c) in enumerate(V_LAYOUT)}
V_ROWS = -(-len(V_LAYOUT) // 8) * 8              # pad rows to a sublane multiple
V_COLS = 128


# ---------------------------- math building blocks ----------------------------
def _gelu(x):
    # tanh-approx GELU: routes the transcendental to the EUP slot (co-issues
    # with VALU) instead of a long serial erf polynomial on the VPU.
    c = math.sqrt(2.0 / math.pi)
    return 0.5 * x * (1.0 + jnp.tanh(c * (x + 0.044715 * (x * x * x))))


def _batchnorm(x, gamma, beta):
    # BatchNorm1d training mode (biased variance), single fused reduction over
    # [x | x*x] concatenated along lanes (2C <= 256), gamma/beta folded into a
    # per-channel scale/shift so only two wide (B,C) ops remain.
    # NOTE: E[x^2]-E[x]^2 can lose precision for large-magnitude activations;
    # fine at these scales (activations ~O(1)).
    b, c = x.shape
    inv_n = 1.0 / b
    xcat = jnp.concatenate([x, x * x], axis=-1)                # (B, 2C)
    stats = jnp.sum(xcat, axis=0, keepdims=True) * inv_n       # (1, 2C)
    mean = stats[:, :c]
    var = stats[:, c:] - mean * mean
    scale = lax.rsqrt(var + BN_EPS) * gamma                    # (1, C)
    shift = beta - mean * scale                                # (1, C)
    return x * scale + shift


def _matmul(a, b):
    return jnp.dot(a, b, preferred_element_type=jnp.float32)


def _w(w_ref, name):
    off, k, n = W_SLOTS[name]
    return w_ref[off:off + k, 0:n]


def _v(v_ref, name):
    row, c = V_SLOTS[name]
    return v_ref[row:row + 1, 0:c]


# ----------------------------------- kernel -----------------------------------
def unet_kernel(onehot_ref, x_ref, w_ref, v_ref, out_ref):
    x = x_ref[...]                                    # (B, latent)

    # --- time embedding: one-hot @ padded table (bit-exact gather on MXU) ---
    temb = _matmul(onehot_ref[...], _w(w_ref, "emb"))   # (B, temb)

    # --- fused t_fc projections, computed once, reused by encoder & decoder ---
    tproj = _matmul(temb, _w(w_ref, "tfc_w"))           # (B, sum(hidden[:-1]))
    tprojs, c = [], 0
    for size in HIDDEN[:-1]:
        tprojs.append(tproj[:, c:c + size])
        c += size

    # --- head ---
    h = _gelu(_matmul(x, _w(w_ref, "head_w")) + _v(v_ref, "head_b"))

    # --- encoder ---  (Dropout p=0.0 -> identity)
    hs = []
    for i in range(N_ENC):
        z = _batchnorm(h + tprojs[i],
                       _v(v_ref, f"enc{i}_g"), _v(v_ref, f"enc{i}_beta"))
        h = _gelu(_matmul(z, _w(w_ref, f"enc{i}_w")) + _v(v_ref, f"enc{i}_b"))
        hs.append(h)

    # --- decoder ---
    for i in range(N_ENC):
        z = _batchnorm((h + hs.pop()) * 0.5,
                       _v(v_ref, f"dec{i}_g"), _v(v_ref, f"dec{i}_beta"))
        h = _gelu(_matmul(z, _w(w_ref, f"dec{i}_w")) + _v(v_ref, f"dec{i}_b"))
        h = h + tprojs[N_ENC - 1 - i]

    # --- tail ---
    z = _batchnorm(h, _v(v_ref, "tail_bn1_g"), _v(v_ref, "tail_bn1_beta"))
    z = _gelu(_matmul(z, _w(w_ref, "tail_fc1_w")) + _v(v_ref, "tail_fc1_b"))
    z = _batchnorm(z, _v(v_ref, "tail_bn2_g"), _v(v_ref, "tail_bn2_beta"))
    # Output last dim is 16 (< 128 lanes): masked stores, negligible at B=8.
    out_ref[...] = _matmul(z, _w(w_ref, "tail_fc2_w")) + _v(v_ref, "tail_fc2_b")


@jax.jit
def unet_forward(x, t, packed):
    """x: (B, latent) or (G, B, latent); t: (B,) or (G, B) int32.

    Each group of B rows is one independent forward call (BatchNorm stats are
    computed per group, exactly matching a separate torch forward per group).
    """
    squeeze = (x.ndim == 2)
    if squeeze:
        x = x[None]
        t = t[None]
    g_count, b, _ = x.shape

    # One-hot built in the (jitted) wrapper: exact gather, no int column /
    # lane-broadcast inside the kernel.  Out-of-range t yields a zero
    # embedding (same caveat as before).
    onehot = jax.nn.one_hot(t.astype(jnp.int32), ONEHOT_T, dtype=jnp.float32)

    out = pl.pallas_call(
        unet_kernel,
        out_shape=jax.ShapeDtypeStruct((g_count, b, LATENT_SIZE), jnp.float32),
        grid=(g_count,),
        in_specs=[
            pl.BlockSpec((None, b, ONEHOT_T), lambda g: (g, 0, 0)),
            pl.BlockSpec((None, b, LATENT_SIZE), lambda g: (g, 0, 0)),
            # Parameter slabs: constant index_map -> stay VMEM-resident
            # across all grid steps (no re-DMA).
            pl.BlockSpec((W_ROWS, W_COLS), lambda g: (0, 0)),
            pl.BlockSpec((V_ROWS, V_COLS), lambda g: (0, 0)),
        ],
        out_specs=pl.BlockSpec((None, b, LATENT_SIZE), lambda g: (g, 0, 0)),
        compiler_params=pltpu.CompilerParams(
            dimension_semantics=("parallel",)),   # v7x: both TensorCores
    )(onehot, x, packed["w"], packed["v"])
    return out[0] if squeeze else out


# ------------------------------ parameter init --------------------------------
def init_params(key):
    keys = iter(jax.random.split(key, 64))

    def nk():
        return next(keys)

    p = {}

    def linear(name, fan_in, fan_out, bias=True):
        # torch nn.Linear default init: U(-1/sqrt(fan_in), 1/sqrt(fan_in))
        bound = 1.0 / math.sqrt(fan_in)
        p[name + "_w"] = jax.random.uniform(nk(), (fan_in, fan_out), jnp.float32,
                                            -bound, bound)
        if bias:
            p[name + "_b"] = jax.random.uniform(nk(), (fan_out,), jnp.float32,
                                                -bound, bound)

    def bn(name, c):
        p[name + "_g"] = jnp.ones((c,), jnp.float32)
        p[name + "_beta"] = jnp.zeros((c,), jnp.float32)

    linear("head", LATENT_SIZE, H0)
    now = H0
    for i, size in enumerate(HIDDEN[1:]):
        bn(f"enc{i}", now)
        linear(f"enc{i}", now, size)
        now = size
    for i, size in enumerate(HIDDEN[:-1]):
        linear(f"tfc{i}", TEMB_SIZE, size, bias=False)
    for i, size in enumerate(reversed(HIDDEN[:-1])):
        bn(f"dec{i}", now)
        linear(f"dec{i}", now, size)
        now = size
    bn("tail_bn1", H0)
    linear("tail_fc1", H0, H0)
    bn("tail_bn2", H0)
    linear("tail_fc2", H0, LATENT_SIZE)

    # TimeEmbedding: nn.Embedding default init N(0, 1)
    p["emb"] = jax.random.normal(nk(), (T_STEPS, TEMB_SIZE), jnp.float32)
    return p


def pack_params(p):
    fused = {"tfc_w": jnp.concatenate([p[f"tfc{i}_w"] for i in range(N_ENC)],
                                      axis=1)}
    w_slab = jnp.zeros((W_ROWS, W_COLS), jnp.float32)
    for name, (off, k, n) in W_SLOTS.items():
        if name == "emb":
            w_slab = w_slab.at[off:off + T_STEPS, 0:TEMB_SIZE].set(p["emb"])
        else:
            w = fused[name] if name in fused else p[name]
            w_slab = w_slab.at[off:off + k, 0:n].set(w)
    v_slab = jnp.zeros((V_ROWS, V_COLS), jnp.float32)
    for name, (row, c) in V_SLOTS.items():
        v_slab = v_slab.at[row, 0:c].set(p[name])
    return {"w": w_slab, "v": v_slab}


# ------------------------- pure-JAX reference (torch-literal) -----------------
def unet_reference(x, t, p):
    def gelu(z):
        # exact erf GELU (torch nn.GELU() default)
        return 0.5 * z * (1.0 + lax.erf(z * (1.0 / math.sqrt(2.0))))

    def bn(name, z):
        mean = jnp.mean(z, axis=0, keepdims=True)
        var = jnp.mean((z - mean) ** 2, axis=0, keepdims=True)
        return (z - mean) / jnp.sqrt(var + BN_EPS) * p[name + "_g"] + p[name + "_beta"]

    def lin(name, z):
        return z @ p[name + "_w"] + p[name + "_b"]

    temb = p["emb"][t]
    h = gelu(lin("head", x))
    hs = []
    for i in range(N_ENC):
        h = gelu(lin(f"enc{i}", bn(f"enc{i}", h + temb @ p[f"tfc{i}_w"])))
        hs.append(h)
    for i in range(N_ENC):
        h = gelu(lin(f"dec{i}", bn(f"dec{i}", (h + hs.pop()) * 0.5)))
        h = h + temb @ p[f"tfc{N_ENC - 1 - i}_w"]
    z = gelu(lin("tail_fc1", bn("tail_bn1", h)))
    return lin("tail_fc2", bn("tail_bn2", z))


# ------------------------------------ main -------------------------------------
if __name__ == "__main__":
    key = jax.random.PRNGKey(0)
    k_param, k_x, k_t = jax.random.split(key, 3)

    params = init_params(k_param)
    packed = pack_params(params)

    # GROUPS independent forward calls stacked into one kernel launch.
    x = jax.random.normal(k_x, (GROUPS, BATCH, LATENT_SIZE), jnp.float32)
    t = jax.random.randint(k_t, (GROUPS, BATCH), 0, T_STEPS, dtype=jnp.int32)

    out = unet_forward(x, t, packed)
    out = jax.block_until_ready(out)

    ref = jnp.stack([unet_reference(x[g], t[g], params) for g in range(GROUPS)])
    assert out.shape == (GROUPS, BATCH, LATENT_SIZE)
    max_diff = float(jnp.max(jnp.abs(out - ref)))
    # Tolerance relaxed vs the erf-based torch-literal reference because the
    # kernel uses the tanh-approximate GELU (perf-review item).
    assert jnp.allclose(out, ref, atol=5e-3, rtol=5e-3), (
        f"mismatch vs reference, max abs diff = {max_diff}")
    print("KERNEL_OK")
</pallas_src>

<mosaic_0001>
module attributes {stable_mosaic.version = 11 : i64} {
  func.func @unet_kernel(%arg0: i32, %arg1: memref<1x8x128xf32, #tpu.memory_space<vmem>>, %arg2: memref<1x8x16xf32, #tpu.memory_space<vmem>>, %arg3: memref<528x128xf32, #tpu.memory_space<vmem>>, %arg4: memref<24x128xf32, #tpu.memory_space<vmem>>, %arg5: memref<1x8x16xf32, #tpu.memory_space<vmem>>) attributes {dimension_semantics = [#tpu.dimension_semantics<parallel>], iteration_bounds = array<i64: 4>, scalar_prefetch = 0 : i64, scratch_operands = 0 : i64, tpu.core_type = #tpu.core_type<tc>, window_params = [{transform_indices = @transform_0, window_bounds = array<i64: 1, 8, 128>}, {transform_indices = @transform_1, window_bounds = array<i64: 1, 8, 16>}, {pipeline_mode = #tpu.pipeline_mode<synchronous>, transform_indices = @transform_2, window_bounds = array<i64: 528, 128>}, {pipeline_mode = #tpu.pipeline_mode<synchronous>, transform_indices = @transform_3, window_bounds = array<i64: 24, 128>}, {transform_indices = @transform_4, window_bounds = array<i64: 1, 8, 16>}]} {
    %c0 = arith.constant 0 : index
    %c0_0 = arith.constant 0 : index
    %c0_1 = arith.constant 0 : index
    %0 = vector.load %arg2[%c0, %c0_0, %c0_1] : memref<1x8x16xf32, #tpu.memory_space<vmem>>, vector<1x8x16xf32>
    %1 = vector.shape_cast %0 : vector<1x8x16xf32> to vector<8x16xf32>
    %c0_2 = arith.constant 0 : index
    %c0_3 = arith.constant 0 : index
    %c0_4 = arith.constant 0 : index
    %2 = vector.load %arg1[%c0_2, %c0_3, %c0_4] : memref<1x8x128xf32, #tpu.memory_space<vmem>>, vector<1x8x128xf32>
    %3 = vector.shape_cast %2 : vector<1x8x128xf32> to vector<8x128xf32>
    %c400 = arith.constant 400 : index
    %c0_5 = arith.constant 0 : index
    %4 = vector.load %arg3[%c400, %c0_5] : memref<528x128xf32, #tpu.memory_space<vmem>>, vector<128x32xf32>
    %cst = arith.constant dense<0.000000e+00> : vector<8x32xf32>
    %5 = tpu.matmul %3, %4, %cst {dimension_numbers = #tpu.dot_dimension_numbers<[1], [0], [0], [1], [0, 0, 1, 1], [], []>} : vector<8x128xf32>, vector<128x32xf32>, vector<8x32xf32> -> vector<8x32xf32>
    %c112 = arith.constant 112 : index
    %c0_6 = arith.constant 0 : index
    %6 = vector.load %arg3[%c112, %c0_6] : memref<528x128xf32, #tpu.memory_space<vmem>>, vector<32x96xf32>
    %cst_7 = arith.constant dense<0.000000e+00> : vector<8x96xf32>
    %7 = tpu.matmul %5, %6, %cst_7 {dimension_numbers = #tpu.dot_dimension_numbers<[1], [0], [0], [1], [0, 0, 1, 1], [], []>} : vector<8x32xf32>, vector<32x96xf32>, vector<8x96xf32> -> vector<8x96xf32>
    %8 = vector.extract_strided_slice %7 {offsets = [0, 0], sizes = [8, 32], strides = [1, 1]} : vector<8x96xf32> to vector<8x32xf32>
    %9 = vector.extract_strided_slice %7 {offsets = [0, 32], sizes = [8, 64], strides = [1, 1]} : vector<8x96xf32> to vector<8x64xf32>
    %c0_8 = arith.constant 0 : index
    %c0_9 = arith.constant 0 : index
    %10 = vector.load %arg3[%c0_8, %c0_9] : memref<528x128xf32, #tpu.memory_space<vmem>>, vector<16x32xf32>
    %cst_10 = arith.constant dense<0.000000e+00> : vector<8x32xf32>
    %11 = tpu.matmul %1, %10, %cst_10 {dimension_numbers = #tpu.dot_dimension_numbers<[1], [0], [0], [1], [0, 0, 1, 1], [], []>} : vector<8x16xf32>, vector<16x32xf32>, vector<8x32xf32> -> vector<8x32xf32>
    %c0_11 = arith.constant 0 : index
    %c0_12 = arith.constant 0 : index
    %12 = vector.load %arg4[%c0_11, %c0_12] : memref<24x128xf32, #tpu.memory_space<vmem>>, vector<1x32xf32>
    %13 = vector.broadcast %12 : vector<1x32xf32> to vector<8x32xf32>
    %14 = arith.addf %11, %13 : vector<8x32xf32>
    %cst_13 = arith.constant 5.000000e-01 : f32
    %15 = vector.broadcast %cst_13 : f32 to vector<8x32xf32>
    %16 = arith.mulf %15, %14 : vector<8x32xf32>
    %17 = arith.mulf %14, %14 : vector<8x32xf32>
    %18 = arith.mulf %17, %14 : vector<8x32xf32>
    %cst_14 = arith.constant 4.471500e-02 : f32
    %19 = vector.broadcast %cst_14 : f32 to vector<8x32xf32>
    %20 = arith.mulf %19, %18 : vector<8x32xf32>
    %21 = arith.addf %14, %20 : vector<8x32xf32>
    %cst_15 = arith.constant 0.797884583 : f32
    %22 = vector.broadcast %cst_15 : f32 to vector<8x32xf32>
    %23 = arith.mulf %22, %21 : vector<8x32xf32>
    %24 = math.tanh %23 : vector<8x32xf32>
    %cst_16 = arith.constant 1.000000e+00 : f32
    %25 = vector.broadcast %cst_16 : f32 to vector<8x32xf32>
    %26 = arith.addf %25, %24 : vector<8x32xf32>
    %27 = arith.mulf %16, %26 : vector<8x32xf32>
    %28 = arith.addf %27, %8 : vector<8x32xf32>
    %c1 = arith.constant 1 : index
    %c0_17 = arith.constant 0 : index
    %29 = vector.load %arg4[%c1, %c0_17] : memref<24x128xf32, #tpu.memory_space<vmem>>, vector<1x32xf32>
    %c2 = arith.constant 2 : index
    %c0_18 = arith.constant 0 : index
    %30 = vector.load %arg4[%c2, %c0_18] : memref<24x128xf32, #tpu.memory_space<vmem>>, vector<1x32xf32>
    %31 = arith.mulf %28, %28 : vector<8x32xf32>
    %32 = tpu.concatenate %28, %31 in 1 : vector<8x32xf32>, vector<8x32xf32> -> vector<8x64xf32>
    %cst_19 = arith.constant dense<0.000000e+00> : vector<64xf32>
    %33 = vector.multi_reduction <add>, %32, %cst_19 [0] : vector<8x64xf32> to vector<64xf32>
    %34 = vector.shape_cast %33 : vector<64xf32> to vector<1x64xf32>
    %cst_20 = arith.constant 1.250000e-01 : f32
    %35 = vector.broadcast %cst_20 : f32 to vector<1x64xf32>
    %36 = arith.mulf %34, %35 : vector<1x64xf32>
    %37 = vector.extract_strided_slice %36 {offsets = [0, 0], sizes = [1, 32], strides = [1, 1]} : vector<1x64xf32> to vector<1x32xf32>
    %38 = vector.extract_strided_slice %36 {offsets = [0, 32], sizes = [1, 32], strides = [1, 1]} : vector<1x64xf32> to vector<1x32xf32>
    %39 = arith.mulf %37, %37 : vector<1x32xf32>
    %40 = arith.subf %38, %39 : vector<1x32xf32>
    %cst_21 = arith.constant 9.99999974E-6 : f32
    %41 = vector.broadcast %cst_21 : f32 to vector<1x32xf32>
    %42 = arith.addf %40, %41 : vector<1x32xf32>
    %43 = math.rsqrt %42 : vector<1x32xf32>
    %44 = arith.mulf %43, %29 : vector<1x32xf32>
    %45 = arith.mulf %37, %44 : vector<1x32xf32>
    %46 = arith.subf %30, %45 : vector<1x32xf32>
    %47 = vector.broadcast %44 : vector<1x32xf32> to vector<8x32xf32>
    %48 = arith.mulf %28, %47 : vector<8x32xf32>
    %49 = vector.broadcast %46 : vector<1x32xf32> to vector<8x32xf32>
    %50 = arith.addf %48, %49 : vector<8x32xf32>
    %c16 = arith.constant 16 : index
    %c0_22 = arith.constant 0 : index
    %51 = vector.load %arg3[%c16, %c0_22] : memref<528x128xf32, #tpu.memory_space<vmem>>, vector<32x64xf32>
    %cst_23 = arith.constant dense<0.000000e+00> : vector<8x64xf32>
    %52 = tpu.matmul %50, %51, %cst_23 {dimension_numbers = #tpu.dot_dimension_numbers<[1], [0], [0], [1], [0, 0, 1, 1], [], []>} : vector<8x32xf32>, vector<32x64xf32>, vector<8x64xf32> -> vector<8x64xf32>
    %c3 = arith.constant 3 : index
    %c0_24 = arith.constant 0 : index
    %53 = vector.load %arg4[%c3, %c0_24] : memref<24x128xf32, #tpu.memory_space<vmem>>, vector<1x64xf32>
    %54 = vector.broadcast %53 : vector<1x64xf32> to vector<8x64xf32>
    %55 = arith.addf %52, %54 : vector<8x64xf32>
    %cst_25 = arith.constant 5.000000e-01 : f32
    %56 = vector.broadcast %cst_25 : f32 to vector<8x64xf32>
    %57 = arith.mulf %56, %55 : vector<8x64xf32>
    %58 = arith.mulf %55, %55 : vector<8x64xf32>
    %59 = arith.mulf %58, %55 : vector<8x64xf32>
    %cst_26 = arith.constant 4.471500e-02 : f32
    %60 = vector.broadcast %cst_26 : f32 to vector<8x64xf32>
    %61 = arith.mulf %60, %59 : vector<8x64xf32>
    %62 = arith.addf %55, %61 : vector<8x64xf32>
    %cst_27 = arith.constant 0.797884583 : f32
    %63 = vector.broadcast %cst_27 : f32 to vector<8x64xf32>
    %64 = arith.mulf %63, %62 : vector<8x64xf32>
    %65 = math.tanh %64 : vector<8x64xf32>
    %cst_28 = arith.constant 1.000000e+00 : f32
    %66 = vector.broadcast %cst_28 : f32 to vector<8x64xf32>
    %67 = arith.addf %66, %65 : vector<8x64xf32>
    %68 = arith.mulf %57, %67 : vector<8x64xf32>
    %69 = arith.addf %68, %9 : vector<8x64xf32>
    %c4 = arith.constant 4 : index
    %c0_29 = arith.constant 0 : index
    %70 = vector.load %arg4[%c4, %c0_29] : memref<24x128xf32, #tpu.memory_space<vmem>>, vector<1x64xf32>
    %c5 = arith.constant 5 : index
    %c0_30 = arith.constant 0 : index
    %71 = vector.load %arg4[%c5, %c0_30] : memref<24x128xf32, #tpu.memory_space<vmem>>, vector<1x64xf32>
    %72 = arith.mulf %69, %69 : vector<8x64xf32>
    %73 = tpu.concatenate %69, %72 in 1 : vector<8x64xf32>, vector<8x64xf32> -> vector<8x128xf32>
    %cst_31 = arith.constant dense<0.000000e+00> : vector<128xf32>
    %74 = vector.multi_reduction <add>, %73, %cst_31 [0] : vector<8x128xf32> to vector<128xf32>
    %75 = vector.shape_cast %74 : vector<128xf32> to vector<1x128xf32>
    %cst_32 = arith.constant 1.250000e-01 : f32
    %76 = vector.broadcast %cst_32 : f32 to vector<1x128xf32>
    %77 = arith.mulf %75, %76 : vector<1x128xf32>
    %78 = vector.extract_strided_slice %77 {offsets = [0, 0], sizes = [1, 64], strides = [1, 1]} : vector<1x128xf32> to vector<1x64xf32>
    %79 = vector.extract_strided_slice %77 {offsets = [0, 64], sizes = [1, 64], strides = [1, 1]} : vector<1x128xf32> to vector<1x64xf32>
    %80 = arith.mulf %78, %78 : vector<1x64xf32>
    %81 = arith.subf %79, %80 : vector<1x64xf32>
    %cst_33 = arith.constant 9.99999974E-6 : f32
    %82 = vector.broadcast %cst_33 : f32 to vector<1x64xf32>
    %83 = arith.addf %81, %82 : vector<1x64xf32>
    %84 = math.rsqrt %83 : vector<1x64xf32>
    %85 = arith.mulf %84, %70 : vector<1x64xf32>
    %86 = arith.mulf %78, %85 : vector<1x64xf32>
    %87 = arith.subf %71, %86 : vector<1x64xf32>
    %88 = vector.broadcast %85 : vector<1x64xf32> to vector<8x64xf32>
    %89 = arith.mulf %69, %88 : vector<8x64xf32>
    %90 = vector.broadcast %87 : vector<1x64xf32> to vector<8x64xf32>
    %91 = arith.addf %89, %90 : vector<8x64xf32>
    %c48 = arith.constant 48 : index
    %c0_34 = arith.constant 0 : index
    %92 = vector.load %arg3[%c48, %c0_34] : memref<528x128xf32, #tpu.memory_space<vmem>>, vector<64x128xf32>
    %cst_35 = arith.constant dense<0.000000e+00> : vector<8x128xf32>
    %93 = tpu.matmul %91, %92, %cst_35 {dimension_numbers = #tpu.dot_dimension_numbers<[1], [0], [0], [1], [0, 0, 1, 1], [], []>} : vector<8x64xf32>, vector<64x128xf32>, vector<8x128xf32> -> vector<8x128xf32>
    %c6 = arith.constant 6 : index
    %c0_36 = arith.constant 0 : index
    %94 = vector.load %arg4[%c6, %c0_36] : memref<24x128xf32, #tpu.memory_space<vmem>>, vector<1x128xf32>
    %95 = vector.broadcast %94 : vector<1x128xf32> to vector<8x128xf32>
    %96 = arith.addf %93, %95 : vector<8x128xf32>
    %cst_37 = arith.constant 5.000000e-01 : f32
    %97 = vector.broadcast %cst_37 : f32 to vector<8x128xf32>
    %98 = arith.mulf %97, %96 : vector<8x128xf32>
    %99 = arith.mulf %96, %96 : vector<8x128xf32>
    %100 = arith.mulf %99, %96 : vector<8x128xf32>
    %cst_38 = arith.constant 4.471500e-02 : f32
    %101 = vector.broadcast %cst_38 : f32 to vector<8x128xf32>
    %102 = arith.mulf %101, %100 : vector<8x128xf32>
    %103 = arith.addf %96, %102 : vector<8x128xf32>
    %cst_39 = arith.constant 0.797884583 : f32
    %104 = vector.broadcast %cst_39 : f32 to vector<8x128xf32>
    %105 = arith.mulf %104, %103 : vector<8x128xf32>
    %106 = math.tanh %105 : vector<8x128xf32>
    %cst_40 = arith.constant 1.000000e+00 : f32
    %107 = vector.broadcast %cst_40 : f32 to vector<8x128xf32>
    %108 = arith.addf %107, %106 : vector<8x128xf32>
    %109 = arith.mulf %98, %108 : vector<8x128xf32>
    %110 = arith.addf %109, %109 : vector<8x128xf32>
    %cst_41 = arith.constant 5.000000e-01 : f32
    %111 = vector.broadcast %cst_41 : f32 to vector<8x128xf32>
    %112 = arith.mulf %110, %111 : vector<8x128xf32>
    %c7 = arith.constant 7 : index
    %c0_42 = arith.constant 0 : index
    %113 = vector.load %arg4[%c7, %c0_42] : memref<24x128xf32, #tpu.memory_space<vmem>>, vector<1x128xf32>
    %c8 = arith.constant 8 : index
    %c0_43 = arith.constant 0 : index
    %114 = vector.load %arg4[%c8, %c0_43] : memref<24x128xf32, #tpu.memory_space<vmem>>, vector<1x128xf32>
    %115 = arith.mulf %112, %112 : vector<8x128xf32>
    %116 = tpu.concatenate %112, %115 in 1 : vector<8x128xf32>, vector<8x128xf32> -> vector<8x256xf32>
    %cst_44 = arith.constant dense<0.000000e+00> : vector<256xf32>
    %117 = vector.multi_reduction <add>, %116, %cst_44 [0] : vector<8x256xf32> to vector<256xf32>
    %118 = vector.shape_cast %117 : vector<256xf32> to vector<1x256xf32>
    %cst_45 = arith.constant 1.250000e-01 : f32
    %119 = vector.broadcast %cst_45 : f32 to vector<1x256xf32>
    %120 = arith.mulf %118, %119 : vector<1x256xf32>
    %121 = vector.extract_strided_slice %120 {offsets = [0, 0], sizes = [1, 128], strides = [1, 1]} : vector<1x256xf32> to vector<1x128xf32>
    %122 = vector.extract_strided_slice %120 {offsets = [0, 128], sizes = [1, 128], strides = [1, 1]} : vector<1x256xf32> to vector<1x128xf32>
    %123 = arith.mulf %121, %121 : vector<1x128xf32>
    %124 = arith.subf %122, %123 : vector<1x128xf32>
    %cst_46 = arith.constant 9.99999974E-6 : f32
    %125 = vector.broadcast %cst_46 : f32 to vector<1x128xf32>
    %126 = arith.addf %124, %125 : vector<1x128xf32>
    %127 = math.rsqrt %126 : vector<1x128xf32>
    %128 = arith.mulf %127, %113 : vector<1x128xf32>
    %129 = arith.mulf %121, %128 : vector<1x128xf32>
    %130 = arith.subf %114, %129 : vector<1x128xf32>
    %131 = vector.broadcast %128 : vector<1x128xf32> to vector<8x128xf32>
    %132 = arith.mulf %112, %131 : vector<8x128xf32>
    %133 = vector.broadcast %130 : vector<1x128xf32> to vector<8x128xf32>
    %134 = arith.addf %132, %133 : vector<8x128xf32>
    %c144 = arith.constant 144 : index
    %c0_47 = arith.constant 0 : index
    %135 = vector.load %arg3[%c144, %c0_47] : memref<528x128xf32, #tpu.memory_space<vmem>>, vector<128x64xf32>
    %cst_48 = arith.constant dense<0.000000e+00> : vector<8x64xf32>
    %136 = tpu.matmul %134, %135, %cst_48 {dimension_numbers = #tpu.dot_dimension_numbers<[1], [0], [0], [1], [0, 0, 1, 1], [], []>} : vector<8x128xf32>, vector<128x64xf32>, vector<8x64xf32> -> vector<8x64xf32>
    %c9 = arith.constant 9 : index
    %c0_49 = arith.constant 0 : index
    %137 = vector.load %arg4[%c9, %c0_49] : memref<24x128xf32, #tpu.memory_space<vmem>>, vector<1x64xf32>
    %138 = vector.broadcast %137 : vector<1x64xf32> to vector<8x64xf32>
    %139 = arith.addf %136, %138 : vector<8x64xf32>
    %cst_50 = arith.constant 5.000000e-01 : f32
    %140 = vector.broadcast %cst_50 : f32 to vector<8x64xf32>
    %141 = arith.mulf %140, %139 : vector<8x64xf32>
    %142 = arith.mulf %139, %139 : vector<8x64xf32>
    %143 = arith.mulf %142, %139 : vector<8x64xf32>
    %cst_51 = arith.constant 4.471500e-02 : f32
    %144 = vector.broadcast %cst_51 : f32 to vector<8x64xf32>
    %145 = arith.mulf %144, %143 : vector<8x64xf32>
    %146 = arith.addf %139, %145 : vector<8x64xf32>
    %cst_52 = arith.constant 0.797884583 : f32
    %147 = vector.broadcast %cst_52 : f32 to vector<8x64xf32>
    %148 = arith.mulf %147, %146 : vector<8x64xf32>
    %149 = math.tanh %148 : vector<8x64xf32>
    %cst_53 = arith.constant 1.000000e+00 : f32
    %150 = vector.broadcast %cst_53 : f32 to vector<8x64xf32>
    %151 = arith.addf %150, %149 : vector<8x64xf32>
    %152 = arith.mulf %141, %151 : vector<8x64xf32>
    %153 = arith.addf %152, %9 : vector<8x64xf32>
    %154 = arith.addf %153, %68 : vector<8x64xf32>
    %cst_54 = arith.constant 5.000000e-01 : f32
    %155 = vector.broadcast %cst_54 : f32 to vector<8x64xf32>
    %156 = arith.mulf %154, %155 : vector<8x64xf32>
    %c10 = arith.constant 10 : index
    %c0_55 = arith.constant 0 : index
    %157 = vector.load %arg4[%c10, %c0_55] : memref<24x128xf32, #tpu.memory_space<vmem>>, vector<1x64xf32>
    %c11 = arith.constant 11 : index
    %c0_56 = arith.constant 0 : index
    %158 = vector.load %arg4[%c11, %c0_56] : memref<24x128xf32, #tpu.memory_space<vmem>>, vector<1x64xf32>
    %159 = arith.mulf %156, %156 : vector<8x64xf32>
    %160 = tpu.concatenate %156, %159 in 1 : vector<8x64xf32>, vector<8x64xf32> -> vector<8x128xf32>
    %cst_57 = arith.constant dense<0.000000e+00> : vector<128xf32>
    %161 = vector.multi_reduction <add>, %160, %cst_57 [0] : vector<8x128xf32> to vector<128xf32>
    %162 = vector.shape_cast %161 : vector<128xf32> to vector<1x128xf32>
    %cst_58 = arith.constant 1.250000e-01 : f32
    %163 = vector.broadcast %cst_58 : f32 to vector<1x128xf32>
    %164 = arith.mulf %162, %163 : vector<1x128xf32>
    %165 = vector.extract_strided_slice %164 {offsets = [0, 0], sizes = [1, 64], strides = [1, 1]} : vector<1x128xf32> to vector<1x64xf32>
    %166 = vector.extract_strided_slice %164 {offsets = [0, 64], sizes = [1, 64], strides = [1, 1]} : vector<1x128xf32> to vector<1x64xf32>
    %167 = arith.mulf %165, %165 : vector<1x64xf32>
    %168 = arith.subf %166, %167 : vector<1x64xf32>
    %cst_59 = arith.constant 9.99999974E-6 : f32
    %169 = vector.broadcast %cst_59 : f32 to vector<1x64xf32>
    %170 = arith.addf %168, %169 : vector<1x64xf32>
    %171 = math.rsqrt %170 : vector<1x64xf32>
    %172 = arith.mulf %171, %157 : vector<1x64xf32>
    %173 = arith.mulf %165, %172 : vector<1x64xf32>
    %174 = arith.subf %158, %173 : vector<1x64xf32>
    %175 = vector.broadcast %172 : vector<1x64xf32> to vector<8x64xf32>
    %176 = arith.mulf %156, %175 : vector<8x64xf32>
    %177 = vector.broadcast %174 : vector<1x64xf32> to vector<8x64xf32>
    %178 = arith.addf %176, %177 : vector<8x64xf32>
    %c272 = arith.constant 272 : index
    %c0_60 = arith.constant 0 : index
    %179 = vector.load %arg3[%c272, %c0_60] : memref<528x128xf32, #tpu.memory_space<vmem>>, vector<64x32xf32>
    %cst_61 = arith.constant dense<0.000000e+00> : vector<8x32xf32>
    %180 = tpu.matmul %178, %179, %cst_61 {dimension_numbers = #tpu.dot_dimension_numbers<[1], [0], [0], [1], [0, 0, 1, 1], [], []>} : vector<8x64xf32>, vector<64x32xf32>, vector<8x32xf32> -> vector<8x32xf32>
    %c12 = arith.constant 12 : index
    %c0_62 = arith.constant 0 : index
    %181 = vector.load %arg4[%c12, %c0_62] : memref<24x128xf32, #tpu.memory_space<vmem>>, vector<1x32xf32>
    %182 = vector.broadcast %181 : vector<1x32xf32> to vector<8x32xf32>
    %183 = arith.addf %180, %182 : vector<8x32xf32>
    %cst_63 = arith.constant 5.000000e-01 : f32
    %184 = vector.broadcast %cst_63 : f32 to vector<8x32xf32>
    %185 = arith.mulf %184, %183 : vector<8x32xf32>
    %186 = arith.mulf %183, %183 : vector<8x32xf32>
    %187 = arith.mulf %186, %183 : vector<8x32xf32>
    %cst_64 = arith.constant 4.471500e-02 : f32
    %188 = vector.broadcast %cst_64 : f32 to vector<8x32xf32>
    %189 = arith.mulf %188, %187 : vector<8x32xf32>
    %190 = arith.addf %183, %189 : vector<8x32xf32>
    %cst_65 = arith.constant 0.797884583 : f32
    %191 = vector.broadcast %cst_65 : f32 to vector<8x32xf32>
    %192 = arith.mulf %191, %190 : vector<8x32xf32>
    %193 = math.tanh %192 : vector<8x32xf32>
    %cst_66 = arith.constant 1.000000e+00 : f32
    %194 = vector.broadcast %cst_66 : f32 to vector<8x32xf32>
    %195 = arith.addf %194, %193 : vector<8x32xf32>
    %196 = arith.mulf %185, %195 : vector<8x32xf32>
    %197 = arith.addf %196, %8 : vector<8x32xf32>
    %c13 = arith.constant 13 : index
    %c0_67 = arith.constant 0 : index
    %198 = vector.load %arg4[%c13, %c0_67] : memref<24x128xf32, #tpu.memory_space<vmem>>, vector<1x32xf32>
    %c14 = arith.constant 14 : index
    %c0_68 = arith.constant 0 : index
    %199 = vector.load %arg4[%c14, %c0_68] : memref<24x128xf32, #tpu.memory_space<vmem>>, vector<1x32xf32>
    %200 = arith.mulf %197, %197 : vector<8x32xf32>
    %201 = tpu.concatenate %197, %200 in 1 : vector<8x32xf32>, vector<8x32xf32> -> vector<8x64xf32>
    %cst_69 = arith.constant dense<0.000000e+00> : vector<64xf32>
    %202 = vector.multi_reduction <add>, %201, %cst_69 [0] : vector<8x64xf32> to vector<64xf32>
    %203 = vector.shape_cast %202 : vector<64xf32> to vector<1x64xf32>
    %cst_70 = arith.constant 1.250000e-01 : f32
    %204 = vector.broadcast %cst_70 : f32 to vector<1x64xf32>
    %205 = arith.mulf %203, %204 : vector<1x64xf32>
    %206 = vector.extract_strided_slice %205 {offsets = [0, 0], sizes = [1, 32], strides = [1, 1]} : vector<1x64xf32> to vector<1x32xf32>
    %207 = vector.extract_strided_slice %205 {offsets = [0, 32], sizes = [1, 32], strides = [1, 1]} : vector<1x64xf32> to vector<1x32xf32>
    %208 = arith.mulf %206, %206 : vector<1x32xf32>
    %209 = arith.subf %207, %208 : vector<1x32xf32>
    %cst_71 = arith.constant 9.99999974E-6 : f32
    %210 = vector.broadcast %cst_71 : f32 to vector<1x32xf32>
    %211 = arith.addf %209, %210 : vector<1x32xf32>
    %212 = math.rsqrt %211 : vector<1x32xf32>
    %213 = arith.mulf %212, %198 : vector<1x32xf32>
    %214 = arith.mulf %206, %213 : vector<1x32xf32>
    %215 = arith.subf %199, %214 : vector<1x32xf32>
    %216 = vector.broadcast %213 : vector<1x32xf32> to vector<8x32xf32>
    %217 = arith.mulf %197, %216 : vector<8x32xf32>
    %218 = vector.broadcast %215 : vector<1x32xf32> to vector<8x32xf32>
    %219 = arith.addf %217, %218 : vector<8x32xf32>
    %c336 = arith.constant 336 : index
    %c0_72 = arith.constant 0 : index
    %220 = vector.load %arg3[%c336, %c0_72] : memref<528x128xf32, #tpu.memory_space<vmem>>, vector<32x32xf32>
    %cst_73 = arith.constant dense<0.000000e+00> : vector<8x32xf32>
    %221 = tpu.matmul %219, %220, %cst_73 {dimension_numbers = #tpu.dot_dimension_numbers<[1], [0], [0], [1], [0, 0, 1, 1], [], []>} : vector<8x32xf32>, vector<32x32xf32>, vector<8x32xf32> -> vector<8x32xf32>
    %c15 = arith.constant 15 : index
    %c0_74 = arith.constant 0 : index
    %222 = vector.load %arg4[%c15, %c0_74] : memref<24x128xf32, #tpu.memory_space<vmem>>, vector<1x32xf32>
    %223 = vector.broadcast %222 : vector<1x32xf32> to vector<8x32xf32>
    %224 = arith.addf %221, %223 : vector<8x32xf32>
    %cst_75 = arith.constant 5.000000e-01 : f32
    %225 = vector.broadcast %cst_75 : f32 to vector<8x32xf32>
    %226 = arith.mulf %225, %224 : vector<8x32xf32>
    %227 = arith.mulf %224, %224 : vector<8x32xf32>
    %228 = arith.mulf %227, %224 : vector<8x32xf32>
    %cst_76 = arith.constant 4.471500e-02 : f32
    %229 = vector.broadcast %cst_76 : f32 to vector<8x32xf32>
    %230 = arith.mulf %229, %228 : vector<8x32xf32>
    %231 = arith.addf %224, %230 : vector<8x32xf32>
    %cst_77 = arith.constant 0.797884583 : f32
    %232 = vector.broadcast %cst_77 : f32 to vector<8x32xf32>
    %233 = arith.mulf %232, %231 : vector<8x32xf32>
    %234 = math.tanh %233 : vector<8x32xf32>
    %cst_78 = arith.constant 1.000000e+00 : f32
    %235 = vector.broadcast %cst_78 : f32 to vector<8x32xf32>
    %236 = arith.addf %235, %234 : vector<8x32xf32>
    %237 = arith.mulf %226, %236 : vector<8x32xf32>
    %c16_79 = arith.constant 16 : index
    %c0_80 = arith.constant 0 : index
    %238 = vector.load %arg4[%c16_79, %c0_80] : memref<24x128xf32, #tpu.memory_space<vmem>>, vector<1x32xf32>
    %c17 = arith.constant 17 : index
    %c0_81 = arith.constant 0 : index
    %239 = vector.load %arg4[%c17, %c0_81] : memref<24x128xf32, #tpu.memory_space<vmem>>, vector<1x32xf32>
    %240 = arith.mulf %237, %237 : vector<8x32xf32>
    %241 = tpu.concatenate %237, %240 in 1 : vector<8x32xf32>, vector<8x32xf32> -> vector<8x64xf32>
    %cst_82 = arith.constant dense<0.000000e+00> : vector<64xf32>
    %242 = vector.multi_reduction <add>, %241, %cst_82 [0] : vector<8x64xf32> to vector<64xf32>
    %243 = vector.shape_cast %242 : vector<64xf32> to vector<1x64xf32>
    %cst_83 = arith.constant 1.250000e-01 : f32
    %244 = vector.broadcast %cst_83 : f32 to vector<1x64xf32>
    %245 = arith.mulf %243, %244 : vector<1x64xf32>
    %246 = vector.extract_strided_slice %245 {offsets = [0, 0], sizes = [1, 32], strides = [1, 1]} : vector<1x64xf32> to vector<1x32xf32>
    %247 = vector.extract_strided_slice %245 {offsets = [0, 32], sizes = [1, 32], strides = [1, 1]} : vector<1x64xf32> to vector<1x32xf32>
    %248 = arith.mulf %246, %246 : vector<1x32xf32>
    %249 = arith.subf %247, %248 : vector<1x32xf32>
    %cst_84 = arith.constant 9.99999974E-6 : f32
    %250 = vector.broadcast %cst_84 : f32 to vector<1x32xf32>
    %251 = arith.addf %249, %250 : vector<1x32xf32>
    %252 = math.rsqrt %251 : vector<1x32xf32>
    %253 = arith.mulf %252, %238 : vector<1x32xf32>
    %254 = arith.mulf %246, %253 : vector<1x32xf32>
    %255 = arith.subf %239, %254 : vector<1x32xf32>
    %256 = vector.broadcast %253 : vector<1x32xf32> to vector<8x32xf32>
    %257 = arith.mulf %237, %256 : vector<8x32xf32>
    %258 = vector.broadcast %255 : vector<1x32xf32> to vector<8x32xf32>
    %259 = arith.addf %257, %258 : vector<8x32xf32>
    %c368 = arith.constant 368 : index
    %c0_85 = arith.constant 0 : index
    %260 = vector.load %arg3[%c368, %c0_85] : memref<528x128xf32, #tpu.memory_space<vmem>>, vector<32x16xf32>
    %cst_86 = arith.constant dense<0.000000e+00> : vector<8x16xf32>
    %261 = tpu.matmul %259, %260, %cst_86 {dimension_numbers = #tpu.dot_dimension_numbers<[1], [0], [0], [1], [0, 0, 1, 1], [], []>} : vector<8x32xf32>, vector<32x16xf32>, vector<8x16xf32> -> vector<8x16xf32>
    %c18 = arith.constant 18 : index
    %c0_87 = arith.constant 0 : index
    %262 = vector.load %arg4[%c18, %c0_87] : memref<24x128xf32, #tpu.memory_space<vmem>>, vector<1x16xf32>
    %263 = vector.broadcast %262 : vector<1x16xf32> to vector<8x16xf32>
    %264 = arith.addf %261, %263 : vector<8x16xf32>
    %c0_88 = arith.constant 0 : index
    %c0_89 = arith.constant 0 : index
    %c0_90 = arith.constant 0 : index
    %265 = vector.load %arg5[%c0_88, %c0_89, %c0_90] : memref<1x8x16xf32, #tpu.memory_space<vmem>>, vector<1x8x16xf32>
    %266 = vector.shape_cast %265 : vector<1x8x16xf32> to vector<8x16xf32>
    %267 = vector.shape_cast %264 : vector<8x16xf32> to vector<1x8x16xf32>
    tpu.vector_store %arg5[%c0_88, %c0_89, %c0_90], %267 {strides = array<i32>} : memref<1x8x16xf32, #tpu.memory_space<vmem>>, vector<1x8x16xf32>,
    return
  }
  func.func @transform_0(%arg0: i32) -> (i32, i32, i32) {
    %c0_i32 = arith.constant 0 : i32
    %c0_i32_0 = arith.constant 0 : i32
    %c0_i32_1 = arith.constant 0 : i32
    return %arg0, %c0_i32, %c0_i32_0 : i32, i32, i32
  }
  func.func @transform_1(%arg0: i32) -> (i32, i32, i32) {
    %c0_i32 = arith.constant 0 : i32
    %c0_i32_0 = arith.constant 0 : i32
    %c0_i32_1 = arith.constant 0 : i32
    return %arg0, %c0_i32, %c0_i32_0 : i32, i32, i32
  }
  func.func @transform_2(%arg0: i32) -> (i32, i32) {
    %c0_i32 = arith.constant 0 : i32
    %c0_i32_0 = arith.constant 0 : i32
    %c0_i32_1 = arith.constant 0 : i32
    return %c0_i32, %c0_i32_0 : i32, i32
  }
  func.func @transform_3(%arg0: i32) -> (i32, i32) {
    %c0_i32 = arith.constant 0 : i32
    %c0_i32_0 = arith.constant 0 : i32
    %c0_i32_1 = arith.constant 0 : i32
    return %c0_i32, %c0_i32_0 : i32, i32
  }
  func.func @transform_4(%arg0: i32) -> (i32, i32, i32) {
    %c0_i32 = arith.constant 0 : i32
    %c0_i32_0 = arith.constant 0 : i32
    %c0_i32_1 = arith.constant 0 : i32
    return %arg0, %c0_i32, %c0_i32_0 : i32, i32, i32
  }
}

</mosaic_0001>

<bundles_post_ra>
// kernel: unet_forward.1
= control target key start
LH: loop header
LB: loop body
LE: loop exit
PB: predicated region body
PF: predicated region fallthrough
CT: control target
= control target key end

     0   :  { %9 = vsyncpa [#allocation3], 0  ;;  %s2361_s0 = inlined_call_operand.vmem [shape: f32[4,8,128], index: 0, kind: input, shape index: {}]   ;;  %s2362_s1 = inlined_call_operand.vmem [shape: f32[4,8,16], index: 1, kind: input, shape index: {}]   ;;  %s2363_s2 = inlined_call_operand.hbm [shape: f32[528,128], index: 2, kind: input, shape index: {}]   ;;  %s2364_s3 = inlined_call_operand.hbm [shape: f32[24,128], index: 3, kind: input, shape index: {}]   ;;  %s2365_s4 = inlined_call_operand.hbm [shape: f32[4,8,16], index: 4, kind: output, shape index: {}]  }
   0x1   :  { %10 = vsyncpa [#allocation6], 0 }
   0x2   :  { %11 = vsyncpa [#allocation4], 0 }
   0x3   :  { %13 = vsyncpa [#allocation4 + $0x1], 0  ;;  %s2066_s15 = smov 0   ;;  %s2068_s16 = smov 0  }
   0x4   :  { %s2070_s17 = smov 0   ;;  %s2072_s18 = smov 0  }
   0x5 LB: > { %s2087_s19 = sadd.s32 4294967295, %s2028_s18   ;;  %s1448_s20 = sadd.s32 4294967294, %s2028_s18   ;;  %s2028_s18 = sphi %s2072_s18, %s2383_s18   ;;  %s2024_s17 = sphi %s2070_s17, %s2382_s17   ;;  %s2020_s16 = sphi %s2068_s16, %s2381_s16   ;;  %s2016_s15 = sphi %s2066_s15, %s2380_s15  }
   0x6   : > { %s2091_s21 = sadd.s32 1, %s2028_s18   ;;  %s120_s22 = sadd.s32 1, %s2024_s17 }
   0x7   : > { %s117_s23 = ssub.s32 %s2028_s18, %s2091_s21  ;;  %p130_p0 = scmp.ne.s32.totalorder %s2024_s17, %s2020_s16 }
   0x8   : > { %p118_p1 = scmp.eq.s32.totalorder %s117_s23, 0  ;;  %p131_p2 = scmp.eq.s32.totalorder %s2087_s19, 3 }
   0x9   : > { %p136_p3 = scmp.ne.s32.totalorder %s2020_s16, %s2016_s15  ;;  %p137_p4 = scmp.eq.s32.totalorder %s1448_s20, 3 }
   0xa   : > { %s2102_s24 = scalar_select %p118_p1, %s2024_s17, %s120_s22  }
   0xb   : > { %p2104_p5 = por %p131_p2, %p130_p0  ;;  %p2108_p6 = por %p137_p4, %p136_p3 }
   0xc   : > { %p1449_p7 = scmp.ge.s32.totalorder %s2028_s18, 1  ;;  %p144_p8 = scmp.lt.s32.totalorder %s2028_s18, 5 }
   0xd   : > { %s2369_s25 = scalar_select %p2104_p5, 1, 0 }
   0xe   : > { %s2370_s26 = scalar_select %p2108_p6, 1, 0 }
   0xf   : > { %p2366_p9 = scmp.eq.s32.totalorder %s2087_s19, 0  ;;  %p2115_p10 = pnand %p1449_p7, %p144_p8 }
  0x10   : > { %s2030_s28 = smov [#allocation2]   ;;  %s2031_s5 = smov [#allocation5]  }
  0x11   : > { %s2371_s27 = scalar_select %p2115_p10, 1, 0 }
  0x12   : > { %s156_s29 = sshll.u32 %s2030_s28, 4  ;;  %p1820_p11 = pneg %p2115_p10  ;;  %s157_s29 = int_to_ptr.vmem [resolvable:$true] %s156_s29 }
  0x13   : > { %s169_s6 = sshll.u32 %s2031_s5, 4  ;;  %s1902_s9 = scalar_lea.hbm %s2363_s2, 8448  ;;  %s2127_s6 = int_to_ptr.vmem [resolvable:$true] %s169_s6 }
  0x14   : > { %p2123_p12 = pnand %p2366_p9, %p1820_p11  ;;  %p1903_p13 = scmp.ne.s32.totalorder %s2363_s2, %s1902_s9 }
  0x15   : > { %p1909_p3 = scmp.lt.u32.totalorder %s1902_s9, %s2363_s2 }
  0x16   : > { %p1904_p0 = pneg %p2123_p12 }
  0x18   : > { %p1905_p1 = pnand %p1904_p0, %p1903_p13 }
  0x1a   : > { %p1906_p2 = pneg %p1905_p1 }
  0x1c   : > { %p1911_p4 = pnand %p1909_p3, %p1906_p2 }
  0x1e   : > { %1914 = shalt.err (!%p1911_p4)
}
  0x1f   : > { %s1915_s14 = scalar_lea.vmem %s157_s29, 8448  ;;  %p1923_p9 = scmp.lt.s32.totalorder %s157_s29, %s157_s29 }
  0x20   : > { %p1916_p7 = scmp.ne.s32.totalorder %s157_s29, %s1915_s14  ;;  %p1924_p6 = scmp.lt.s32.totalorder %s1915_s14, %s1915_s14 }
  0x22   : > { %p1918_p8 = pnand %p1916_p7, %p1904_p0  ;;  %p1925_p5 = por %p1924_p6, %p1923_p9 }
  0x24   : > { %p1919_p11 = pneg %p1918_p8 }
  0x26   : > { %p1926_p10 = pnand %p1925_p5, %p1919_p11 }
  0x28   : > { %1929 = shalt.err (!%p1926_p10)
}
  0x29   : > { %s2032_s20 = smov 128   ;;  %s2033_s22 = smov 8  }
  0x2a   : > { %1823 = dma.hbm_to_vmem [thread:$0]  (!%p2123_p12), %s2363_s2, 8448, %s157_s29, [#allocation3], %s2032_s20, %s2032_s20, %s2033_s22  }
  0x2b   : > { %s1930_s8 = scalar_lea.hbm %s2364_s3, 384 }
  0x2c   : > { %p1931_p13 = scmp.ne.s32.totalorder %s2364_s3, %s1930_s8  ;;  %p1937_p9 = scmp.lt.u32.totalorder %s1930_s8, %s2364_s3 }
  0x2e   : > { %p1933_p5 = pnand %p1931_p13, %p1904_p0 }
  0x30   : > { %p1934_p6 = pneg %p1933_p5 }
  0x32   : > { %p1939_p10 = pnand %p1937_p9, %p1934_p6 }
  0x34   : > { %1942 = shalt.err (!%p1939_p10)
}
  0x35   : > { %s1943_s29 = scalar_lea.vmem %s2127_s6, 384  ;;  %p1951_p4 = scmp.lt.s32.totalorder %s2127_s6, %s2127_s6 }
  0x36   : > { %p1944_p1 = scmp.ne.s32.totalorder %s2127_s6, %s1943_s29  ;;  %p1952_p7 = scmp.lt.s32.totalorder %s1943_s29, %s1943_s29 }
  0x38   : > { %p1946_p2 = pnand %p1944_p1, %p1904_p0  ;;  %p1953_p8 = por %p1952_p7, %p1951_p4 }
  0x3a   : > { %p1947_p3 = pneg %p1946_p2 }
  0x3c   : > { %p1954_p11 = pnand %p1953_p8, %p1947_p3 }
  0x3e   : > { %1957 = shalt.err (!%p1954_p11)
}
  0x3f   : > { %1826 = dma.hbm_to_vmem [thread:$0]  (!%p2123_p12), %s2364_s3, 384, %s2127_s6, [#allocation6], %s2032_s20, %s2032_s20, %s2033_s22  }
  0x40   : > { %p2373_p13 = scmp.ne.s32.totalorder %s2371_s27, 0 }
  0x41   : > { %p2374_p5 = scmp.eq.s32.totalorder (!%p2373_p13), %s2087_s19, 0 }
  0x42   : > { %199 = sbr.rel (%p2373_p13) target bundleno = 3996 (0xf9c), region = 36 }
  0x49   : > { %2003 = dma.done.wait (%p2374_p5), [#allocation3], 8448   ;;  %p2375_p0 = pmov %p2374_p5 }
  0x4b   : > { %2005 = vsyncadd (%p2375_p0), [#allocation3], 4294958848  ;;  %p2376_p6 = pmov %p2375_p0 }
  0x4c   : > { %p2377_p9 = pmov %p2375_p0 }
  0x4d   : > { %2007 = dma.done.wait (%p2376_p6), [#allocation6], 384  }
  0x4e   : > { %2009 = vsyncadd (%p2377_p9), [#allocation6], 4294966912  ;;  %v2034_v0 = vmov 0.0|0.0   ;;  %vm2035_vm0 = vmmov 0   ;;  %v2036_v1 = vmov 0.0   ;;  %v242_v2 = vld [vmem:[#allocation2 + $0x190] sm:$0xff] }
  0x4f   : > { %1711 = vmatprep.subr.bf16.mxu0 %v2034_v0  ;;  %1584 = vmatprep.mubr.msk.f32.mxu0 %vm2035_vm0, %v2036_v1  ;;  %v243_v3 = vld [vmem:[#allocation2 + $0x198] sm:$0xff]  ;;  %v244_v4 = vld [vmem:[#allocation2 + $0x1a0] sm:$0xff]  ;;  %v245_v6 = vld [vmem:[#allocation2 + $0x1a8] sm:$0xff]  ;;  %p232_p12 = scmp.lt.s32.totalorder %s2087_s19, 3  ;;  %vm332_vm1 = vcmask 261120   ;;  %vm413_vm2 = vcmask 130048  }
  0x50   : > { %1735 = vmatprep.subr.bf16.mxu1 %v2034_v0  ;;  %1595 = vmatprep.mubr.msk.f32.mxu1 %vm2035_vm0, %v2036_v1  ;;  %v1712_v5 = vpack.c.bf16 %v243_v3, %v242_v2  ;;  %v1715_v7 = vpack.c.bf16 %v245_v6, %v244_v4  ;;  %v246_v8 = vld [vmem:[#allocation2 + $0x1b0] sm:$0xff]  ;;  %v247_v9 = vld [vmem:[#allocation2 + $0x1b8] sm:$0xff]  ;;  %v330_v12 = vld [vmem:[#allocation2 + $0x80] sm:$0xff]  ;;  %s2037_s7 = smov 32   ;;  %vm505_vm3 = vcmask 523264   ;;  %s2038_s8 = smov 96  }
  0x51   : > { %v328_v10 = vld [vmem:[#allocation2 + $0x70] sm:$0xff]  ;;  %v329_v11 = vld [vmem:[#allocation2 + $0x78] sm:$0xff]  ;;  %v331_v13 = vld [vmem:[#allocation2 + $0x88] sm:$0xff]  ;;  %v1718_v14 = vpack.c.bf16 %v247_v9, %v246_v8  ;;  %s233_s27 = scalar_select %p232_p12, %s2087_s19, 3 }
  0x52   : > { %1713 = vmatpush3.bf16.msra.mxu0 %v1712_v5  ;;  %v1736_v15 = vpack.c.bf16 %v329_v11, %v328_v10  ;;  %v248_v16 = vld [vmem:[#allocation2 + $0x1c0] sm:$0xff]  ;;  %v249_v17 = vld [vmem:[#allocation2 + $0x1c8] sm:$0xff]  ;;  %v1739_v18 = vpack.c.bf16 %v331_v13, %v330_v12  ;;  %v250_v20 = vld [vmem:[#allocation2 + $0x1d0] sm:$0xff]  ;;  %v533_v12 = vlaneseq  ;;  %s2039_s9 = smov 64   ;;  %s229_s10 = sand.u32 1, %s2020_s16  }
  0x53   : > { %1714 = vmatprep.subr.bf16.mxu0 %v2034_v0  ;;  %v1721_v19 = vpack.c.bf16 %v249_v17, %v248_v16  ;;  %v251_v21 = vld [vmem:[#allocation2 + $0x1d8] sm:$0xff]  ;;  %v252_v23 = vld [vmem:[#allocation2 + $0x1e0] sm:$0xff]  ;;  %v253_v24 = vld [vmem:[#allocation2 + $0x1e8] sm:$0xff]  ;;  %s1457_s30 = sshll.u32 %s233_s27, 3  ;;  %s1456_s11 = sshll.u32 %s229_s10, 3 }
  0x54   : > { %1737 = vmatpush3.bf16.msra.mxu1 %v1736_v15  ;;  %v1724_v22 = vpack.c.bf16 %v251_v21, %v250_v20  ;;  %v1727_v25 = vpack.c.bf16 %v253_v24, %v252_v23  ;;  %v254_v26 = vld [vmem:[#allocation2 + $0x1f0] sm:$0xff]  ;;  %v255_v27 = vld [vmem:[#allocation2 + $0x1f8] sm:$0xff]  ;;  %v256_v29 = vld [vmem:[#allocation2 + $0x200] sm:$0xff]  ;;  %s235_s22 = scalar_lea.vmem %s2361_s0, %s1457_s30  ;;  %s239_s5 = scalar_lea.vmem %s2362_s1, %s1457_s30  ;;  %v534_v16 = vshrl.u32 %v533_v12, 7 }
  0x55   : > { %1738 = vmatprep.subr.bf16.mxu1 %v2034_v0  ;;  %v1730_v28 = vpack.c.bf16 %v255_v27, %v254_v26  ;;  %v257_v30 = vld [vmem:[#allocation2 + $0x208] sm:$0xff]  ;;  %v241_v32 = vld [vmem:[%s235_s22] sm:$0xff]  ;;  %v1460_v41 = vld [vmem:[#allocation5] ss:$0 sm:$0xff]  ;;  %s1474_s12 = sshll.u32 %s2087_s19, 7  ;;  %s231_s29 = scalar_lea.vmem [#allocation7], %s1456_s11 }
  0x56   : > { %1716 = vmatpush3.bf16.msra.mxu0 %v1715_v7  ;;  %v1733_v31 = vpack.c.bf16 %v257_v30, %v256_v29  ;;  %v406_v33 = vld [vmem:[#allocation2] sm:$0xff]  ;;  %v407_v34 = vld [vmem:[#allocation2 + $0x8] sm:$0xff]  ;;  %v497_v56 = vld [vmem:[#allocation5 + $0x1] sm:$0x1]  ;;  %s1355_s13 = sshll.u32 %s231_s29, 4  ;;  %s2318_s30 = scalar_lea.hbm %s2365_s4, %s1474_s12  ;;  %s2320_s13 = int_to_ptr.vmem [resolvable:$true] %s1355_s13 }
  0x57   : > { %1717 = vmatprep.subr.bf16.mxu0 %v2034_v0  ;;  %v1742_v35 = vpack.c.bf16 %v407_v34, %v406_v33  ;;  %v240_v38 = vld [vmem:[%s239_s5] sm:$0xff]  ;;  %523 = vrot.lane.b32.xlu1 %v497_v56, %s2037_s7  ;;  %v547_v9 = vld [vmem:[#allocation2 + $0x10] sm:$0xff]  ;;  %v548_v10 = vld [vmem:[#allocation2 + $0x18] sm:$0xff]  ;;  %s1342_s6 = scalar_lea.sflag [#allocation4], %s229_s10  ;;  %s1958_s20 = scalar_lea.vmem %s2320_s13, 128 }
  0x58   : > { %1740 = vmatpush3.bf16.msra.mxu1 %v1739_v18  ;;  %v1745_v11 = vpack.c.bf16 %v548_v10, %v547_v9  ;;  %v549_v13 = vld [vmem:[#allocation2 + $0x20] sm:$0xff]  ;;  %v2229_v18 = vsub.s32 0, %v534_v16  ;;  %v1462_v30 = vld [vmem:[#allocation5 + $0x3] ss:$0 sm:$0xff]  ;;  %v698_v9 = vld [vmem:[#allocation2 + $0x68] sm:$0xff]  ;;  %p1959_p10 = scmp.ne.s32.totalorder %s2320_s13, %s1958_s20  ;;  %p2378_p1 = scmp.ne.s32.totalorder %s2369_s25, 0 }
  0x59   : > { %1741 = vmatprep.subr.bf16.mxu1 %v2034_v0  ;;  %s2040_s19 = smov [#allocation7]  }
  0x5a   : > { %1719 = vmatpush3.bf16.msra.mxu0 %v1718_v14  ;;  %v550_v14 = vld [vmem:[#allocation2 + $0x28] sm:$0xff]  ;;  %p1960_p2 = pnand %p1959_p10, %p2378_p1  ;;  %s1962_s22 = sshll.u32 %s2040_s19, 4  ;;  %s1963_s22 = int_to_ptr.vmem [resolvable:$false] %s1962_s22 }
  0x5b   : > { %1720 = vmatprep.subr.bf16.mxu0 %v2034_v0  ;;  %v1748_v15 = vpack.c.bf16 %v550_v14, %v549_v13  ;;  %s1964_s23 = scalar_lea.vmem %s1963_s22, 256  ;;  %p1965_p4 = scmp.lt.s32.totalorder %s2320_s13, %s1963_s22 }
  0x5c   : > { %p1961_p3 = pneg %p1960_p2  ;;  %p1966_p7 = scmp.lt.s32.totalorder %s1964_s23, %s1958_s20 }
  0x5e   : > { %1722 = vmatpush3.bf16.msra.mxu0 %v1721_v19  ;;  %p1967_p8 = por %p1966_p7, %p1965_p4 }
  0x5f   : > { %1723 = vmatprep.subr.bf16.mxu0 %v2034_v0 }
  0x60   : > { %p1968_p11 = pnand %p1967_p8, %p1961_p3 }
  0x62   : > { %1725 = vmatpush3.bf16.msra.mxu0 %v1724_v22  ;;  %v498_v22 = vld [vmem:[#allocation5 + $0x2] sm:$0x1] }
  0x63   : > { %1726 = vmatprep.subr.bf16.mxu0 %v2034_v0 }
  0x66   : > { %1728 = vmatpush3.bf16.msra.mxu0 %v1727_v25 }
  0x67   : > { %1729 = vmatprep.subr.bf16.mxu0 %v2034_v0 }
  0x6a   : > { %1731 = vmatpush3.bf16.msra.mxu0 %v1730_v28 }
  0x6b   : > { %1732 = vmatprep.subr.bf16.mxu0 %v2034_v0 }
  0x6e   : > { %1734 = vmatpush3.bf16.msra.mxu0 %v1733_v31 }
  0x6f   : > { %1762 = vmatprep.subr.bf16.mxu0 %v2034_v0 }
  0x71   : > { %1585 = vmatmul.mubr.f32.vlgmr.msra.gmra.mrb[0].mxu0 %v241_v32 }
  0x72   : > { %1667 = vmatprep.mubr.msk.f32.mxu0 %vm2035_vm0, %v2036_v1 }
  0xc9   : > { %v524_v17 = vpop.permute.xlu1 %523 }
 0x144   : > { %v324_v36 = vpop.f32.mrb[0].mxu0 }
 0x145   : > { %v1586_v37 = vpop.f32.mrb[1].mxu0  ;;  %1596 = vmatmul.mubr.msk.f32.vlgmr.msra.gmra.mrb[0].mxu1 %vm332_vm1, %v324_v36 }
 0x146   : > { %1743 = vmatpush3.bf16.msra.mxu1 %v1742_v35  ;;  %1602 = vmatprep.mubr.msk.f32.mxu1 %vm2035_vm0, %v2036_v1 }
 0x147   : > { %1744 = vmatprep.subr.bf16.mxu1 %v2034_v0 }
 0x149   : > { %1603 = vmatmul.mubr.msk.f32.vlgmr.msra.gmra.mrb[2].mxu1 %vm413_vm2, %v240_v38 }
 0x14a   : > { %1613 = vmatprep.mubr.msk.f32.mxu1 %vm2035_vm0, %v2036_v1  ;;  %1746 = vmatpush3.bf16.msra.mxu1 %v1745_v11 }
 0x14b   : > { %1747 = vmatprep.subr.bf16.mxu1 %v2034_v0 }
 0x14e   : > { %1749 = vmatpush3.bf16.msra.mxu1 %v1748_v15  ;;  %v644_v15 = vld [vmem:[#allocation5 + $0x5] sm:$0x1] }
 0x14f   : > { %1750 = vmatprep.subr.bf16.mxu1 %v2034_v0 }
 0x218   : > { %v2219_v39 = vpop.f32.mrb[0].mxu1 }
 0x219   : > { %v1597_v40 = vpop.f32.mrb[1].mxu1 }
 0x21c   : > { %v483_v42 = vpop.f32.mrb[2].mxu1 }
 0x21d   : > { %v484_v43 = vadd.f32 %v1460_v41, %v483_v42  ;;  %v1604_v44 = vpop.f32.mrb[3].mxu1 }
 0x21f   : > { %v488_v45 = vmul.f32 %v484_v43, %v484_v43  ;;  %v487_v51 = vmul.f32 0.5, %v484_v43 }
 0x221   : > { %v489_v46 = vmul.f32 %v488_v45, %v484_v43 }
 0x223   : > { %v490_v47 = vmul.f32 0.044715, %v489_v46 }
 0x225   : > { %v491_v48 = vadd.f32 %v490_v47, %v484_v43  ;;  %v643_v47 = vld [vmem:[#allocation5 + $0x4] sm:$0x1] }
 0x227   : > { %v492_v49 = vmul.f32 0.7978846, %v491_v48 }
 0x229   : > { %1878 = vtanh.f32 %v492_v49 }
 0x233   : > { %v1879_v50 = vpop.eup %1878 }
 0x234   : > { %v494_v52 = vadd.f32 1.0, %v1879_v50 }
 0x236   : > { %v495_v53 = vmul.f32 %v494_v52, %v487_v51 }
 0x238   : > { %v496_v54 = vadd.f32 %v495_v53, %v2219_v39 }
 0x23a   : > { %v499_v55 = vmul.f32 %v496_v54, %v496_v54 }
 0x23c   : > { %501 = vrot.lane.b32.xlu0 %v499_v55, %s2037_s7 }
 0x2ae   : > { %v502_v57 = vpop.permute.xlu0 %501 }
 0x2af   : > { %v504_v58 = vsel %vm332_vm1, %v496_v54, %v502_v57 }
 0x2b0   : > { %v506_v59 = vsel %vm505_vm3, %v504_v58, 0.0  ;;  %v691_v58 = vld [vmem:[#allocation2 + $0x30] sm:$0xff] }
 0x2b1   : > { %v507_v60 = vrot.slane %v506_v59, 4 }
 0x2b3   : > { %v508_v61 = vadd.f32 %v507_v60, %v506_v59  ;;  %v692_v59 = vld [vmem:[#allocation2 + $0x38] sm:$0xff]  ;;  %v693_v60 = vld [vmem:[#allocation2 + $0x40] sm:$0xff] }
 0x2b5   : > { %v509_v62 = vrot.slane %v508_v61, 2 }
 0x2b7   : > { %v510_v63 = vadd.f32 %v509_v62, %v508_v61  ;;  %v1751_v61 = vpack.c.bf16 %v692_v59, %v691_v58  ;;  %v694_v62 = vld [vmem:[#allocation2 + $0x48] sm:$0xff] }
 0x2b9   : > { %v511_v2 = vrot.slane %v510_v63, 1 }
 0x2bb   : > { %v512_v3 = vadd.f32 %v511_v2, %v510_v63  ;;  %v1754_v63 = vpack.c.bf16 %v694_v62, %v693_v60 }
 0x2bd   : > { %v513_v4 = vmul.f32 0.125, %v512_v3 }
 0x2bf   : > { %v514_v5 = vmul.f32 %v513_v4, %v513_v4 }
 0x2c1   : > { %516 = vrot.lane.b32.xlu0 %v514_v5, %s2037_s7  ;;  %v695_v5 = vld [vmem:[#allocation2 + $0x50] sm:$0xff] }
 0x333   : > { %v517_v6 = vpop.permute.xlu0 %516 }
 0x334   : > { %v519_v7 = vsub.f32 %v513_v4, %v517_v6  ;;  %v696_v6 = vld [vmem:[#allocation2 + $0x58] sm:$0xff] }
 0x336   : > { %v520_v8 = vadd.f32 1e-05, %v519_v7  ;;  %v1757_v7 = vpack.c.bf16 %v696_v6, %v695_v5 }
 0x338   : > { %1880 = vrsqrt.f32 %v520_v8  ;;  %v697_v8 = vld [vmem:[#allocation2 + $0x60] sm:$0xff] }
 0x339   : > { %v1760_v10 = vpack.c.bf16 %v698_v9, %v697_v8 }
 0x342   : > { %v1881_v19 = vpop.eup %1880 }
 0x343   : > { %v526_v20 = vmul.f32 %v1881_v19, %v524_v17 }
 0x345   : > { %v536_v21 = vrot.slane %v526_v20, %v2229_v18  ;;  %528 = vrot.lane.b32.xlu1 %v526_v20, %s2038_s8 }
 0x347   : > { %538 = vrot.lane.b32.xlu0 %v536_v21, %s2038_s8 }
 0x349   : > { %639 = vrot.lane.b32.xlu1 %v2219_v39, %s2038_s8 }
 0x3b7   : > { %v529_v23 = vpop.permute.xlu1 %528 }
 0x3b8   : > { %v531_v24 = vmul.f32 %v529_v23, %v513_v4 }
 0x3b9   : > { %v539_v25 = vpop.permute.xlu0 %538 }
 0x3ba   : > { %v532_v26 = vsub.f32 %v498_v22, %v531_v24  ;;  %v541_v28 = vmul.f32 %v539_v25, %v496_v54  ;;  %v822_v24 = vld [vmem:[#allocation2 + $0x90] sm:$0xff]  ;;  %v823_v25 = vld [vmem:[#allocation2 + $0x98] sm:$0xff] }
 0x3bb   : > { %v2242_v44 = vpop.permute.xlu1 %639 }
 0x3bc   : > { %v545_v27 = vrot.slane %v532_v26, %v2229_v18  ;;  %v1763_v26 = vpack.c.bf16 %v823_v25, %v822_v24 }
 0x3be   : > { %v546_v29 = vadd.f32 %v545_v27, %v541_v28  ;;  %v824_v27 = vld [vmem:[#allocation2 + $0xa0] sm:$0xff]  ;;  %v825_v28 = vld [vmem:[#allocation2 + $0xa8] sm:$0xff]  ;;  %1764 = vmatpush3.bf16.msra.mxu0 %v1763_v26  ;;  %v789_v26 = vld [vmem:[#allocation5 + $0x8] sm:$0x1] }
 0x3bf   : > { %1765 = vmatprep.subr.bf16.mxu0 %v2034_v0 }
 0x3c0   : > { %1614 = vmatmul.mubr.msk.f32.vlgmr.msra.gmra.mrb[4].mxu1 %vm332_vm1, %v546_v29  ;;  %v1766_v29 = vpack.c.bf16 %v825_v28, %v824_v27 }
 0x3c1   : > { %1632 = vmatprep.mubr.msk.f32.mxu1 %vm2035_vm0, %v2036_v1  ;;  %1752 = vmatpush3.bf16.msra.mxu1 %v1751_v61 }
 0x3c2   : > { %1753 = vmatprep.subr.bf16.mxu1 %v2034_v0  ;;  %1767 = vmatpush3.bf16.msra.mxu0 %v1766_v29 }
 0x3c3   : > { %1768 = vmatprep.subr.bf16.mxu0 %v2034_v0 }
 0x3c5   : > { %1755 = vmatpush3.bf16.msra.mxu1 %v1754_v63 }
 0x3c6   : > { %1756 = vmatprep.subr.bf16.mxu1 %v2034_v0 }
 0x3c9   : > { %1758 = vmatpush3.bf16.msra.mxu1 %v1757_v7 }
 0x3ca   : > { %1759 = vmatprep.subr.bf16.mxu1 %v2034_v0 }
 0x3cd   : > { %1761 = vmatpush3.bf16.msra.mxu1 %v1760_v10 }
 0x3ce   : > { %1786 = vmatprep.subr.bf16.mxu1 %v2034_v0 }
 0x493   : > { %v625_v31 = vpop.f32.mrb[4].mxu1 }
 0x494   : > { %v626_v32 = vadd.f32 %v1462_v30, %v625_v31  ;;  %v1615_v33 = vpop.f32.mrb[5].mxu1  ;;  %v826_v30 = vld [vmem:[#allocation2 + $0xb0] sm:$0xff]  ;;  %v827_v31 = vld [vmem:[#allocation2 + $0xb8] sm:$0xff] }
 0x495   : > { %v828_v33 = vld [vmem:[#allocation2 + $0xc0] sm:$0xff] }
 0x496   : > { %v630_v34 = vmul.f32 %v626_v32, %v626_v32  ;;  %v629_v41 = vmul.f32 0.5, %v626_v32 }
 0x498   : > { %v631_v35 = vmul.f32 %v630_v34, %v626_v32  ;;  %v829_v34 = vld [vmem:[#allocation2 + $0xc8] sm:$0xff] }
 0x49a   : > { %v632_v36 = vmul.f32 0.044715, %v631_v35  ;;  %v1772_v35 = vpack.c.bf16 %v829_v34, %v828_v33  ;;  %v1466_v33 = vld [vmem:[#allocation5 + $0x9] ss:$0 sm:$0xff] }
 0x49c   : > { %v633_v37 = vadd.f32 %v632_v36, %v626_v32  ;;  %v1769_v32 = vpack.c.bf16 %v827_v31, %v826_v30  ;;  %v830_v36 = vld [vmem:[#allocation2 + $0xd0] sm:$0xff] }
 0x49e   : > { %v634_v38 = vmul.f32 0.7978846, %v633_v37  ;;  %1770 = vmatpush3.bf16.msra.mxu0 %v1769_v32  ;;  %v831_v37 = vld [vmem:[#allocation2 + $0xd8] sm:$0xff] }
 0x49f   : > { %1771 = vmatprep.subr.bf16.mxu0 %v2034_v0 }
 0x4a0   : > { %1882 = vtanh.f32 %v634_v38  ;;  %v1775_v38 = vpack.c.bf16 %v831_v37, %v830_v36 }
 0x4a2   : > { %1773 = vmatpush3.bf16.msra.mxu0 %v1772_v35 }
 0x4a3   : > { %1774 = vmatprep.subr.bf16.mxu0 %v2034_v0 }
 0x4a6   : > { %1776 = vmatpush3.bf16.msra.mxu0 %v1775_v38 }
 0x4a7   : > { %1777 = vmatprep.subr.bf16.mxu0 %v2034_v0 }
 0x4aa   : > { %v1883_v40 = vpop.eup %1882 }
 0x4ab   : > { %v636_v42 = vadd.f32 1.0, %v1883_v40  ;;  %v832_v40 = vld [vmem:[#allocation2 + $0xe0] sm:$0xff] }
 0x4ad   : > { %v2240_v43 = vmul.f32 %v636_v42, %v629_v41  ;;  %v833_v41 = vld [vmem:[#allocation2 + $0xe8] sm:$0xff] }
 0x4ae   : > { %v1778_v42 = vpack.c.bf16 %v833_v41, %v832_v40 }
 0x4af   : > { %v642_v45 = vadd.f32 %v2242_v44, %v2240_v43 }
 0x4b0   : > { %1779 = vmatpush3.bf16.msra.mxu0 %v1778_v42 }
 0x4b1   : > { %v645_v46 = vmul.f32 %v642_v45, %v642_v45  ;;  %1780 = vmatprep.subr.bf16.mxu0 %v2034_v0 }
 0x4b3   : > { %647 = vrot.lane.b32.xlu0 %v645_v46, %s2039_s9  ;;  %v835_v46 = vld [vmem:[#allocation2 + $0xf8] sm:$0xff] }
 0x4b7   : > { %667 = vrot.lane.b32.xlu0 %v643_v47, %s2039_s9 }
 0x525   : > { %v648_v48 = vpop.permute.xlu0 %647 }
 0x526   : > { %v650_v49 = vsel %vm505_vm3, %v642_v45, %v648_v48  ;;  %v836_v48 = vld [vmem:[#allocation2 + $0x100] sm:$0xff] }
 0x527   : > { %v651_v50 = vrot.slane %v650_v49, 4 }
 0x529   : > { %v652_v51 = vadd.f32 %v651_v50, %v650_v49  ;;  %v668_v11 = vpop.permute.xlu0 %667  ;;  %v837_v49 = vld [vmem:[#allocation2 + $0x108] sm:$0xff] }
 0x52a   : > { %v1784_v50 = vpack.c.bf16 %v837_v49, %v836_v48 }
 0x52b   : > { %v653_v52 = vrot.slane %v652_v51, 2 }
 0x52d   : > { %v654_v53 = vadd.f32 %v653_v52, %v652_v51  ;;  %v1464_v51 = vld [vmem:[#allocation5 + $0x6] ss:$0 sm:$0xff] }
 0x52f   : > { %v655_v54 = vrot.slane %v654_v53, 1 }
 0x531   : > { %v656_v55 = vadd.f32 %v655_v54, %v654_v53 }
 0x533   : > { %v657_v56 = vmul.f32 0.125, %v656_v55 }
 0x535   : > { %v658_v57 = vmul.f32 %v657_v56, %v657_v56 }
 0x537   : > { %660 = vrot.lane.b32.xlu1 %v658_v57, %s2039_s9 }
 0x5a9   : > { %v661_v2 = vpop.permute.xlu1 %660 }
 0x5aa   : > { %v663_v3 = vsub.f32 %v657_v56, %v661_v2 }
 0x5ac   : > { %v664_v4 = vadd.f32 1e-05, %v663_v3 }
 0x5ae   : > { %1884 = vrsqrt.f32 %v664_v4 }
 0x5b8   : > { %v1885_v12 = vpop.eup %1884 }
 0x5b9   : > { %v670_v13 = vmul.f32 %v1885_v12, %v668_v11 }
 0x5bb   : > { %v680_v14 = vrot.slane %v670_v13, %v2229_v18  ;;  %672 = vrot.lane.b32.xlu1 %v670_v13, %s2039_s9 }
 0x5bd   : > { %682 = vrot.lane.b32.xlu0 %v680_v14, %s2039_s9 }
 0x62d   : > { %v673_v16 = vpop.permute.xlu1 %672 }
 0x62e   : > { %v675_v17 = vmul.f32 %v673_v16, %v657_v56 }
 0x62f   : > { %v683_v19 = vpop.permute.xlu0 %682 }
 0x630   : > { %v676_v20 = vsub.f32 %v644_v15, %v675_v17  ;;  %v685_v22 = vmul.f32 %v683_v19, %v642_v45  ;;  %v834_v45 = vld [vmem:[#allocation2 + $0xf0] sm:$0xff] }
 0x631   : > { %v1781_v47 = vpack.c.bf16 %v835_v46, %v834_v45 }
 0x632   : > { %v689_v21 = vrot.slane %v676_v20, %v2229_v18 }
 0x633   : > { %1782 = vmatpush3.bf16.msra.mxu0 %v1781_v47 }
 0x634   : > { %v690_v23 = vadd.f32 %v689_v21, %v685_v22  ;;  %1783 = vmatprep.subr.bf16.mxu0 %v2034_v0 }
 0x636   : > { %1633 = vmatmul.mubr.msk.f32.vlgmr.msra.gmra.mrb[6].mxu1 %vm505_vm3, %v690_v23  ;;  %v788_v23 = vld [vmem:[#allocation5 + $0x7] sm:$0x1] }
 0x637   : > { %1686 = vmatprep.mubr.msk.f32.mxu1 %vm2035_vm0, %v2036_v1  ;;  %1785 = vmatpush3.bf16.msra.mxu0 %v1784_v50 }
 0x709   : > { %v773_v52 = vpop.f32.mrb[6].mxu1 }
 0x70a   : > { %v774_v53 = vadd.f32 %v1464_v51, %v773_v52  ;;  %v1634_v54 = vpop.f32.mrb[7].mxu1 }
 0x70c   : > { %v778_v55 = vmul.f32 %v774_v53, %v774_v53  ;;  %v777_v61 = vmul.f32 0.5, %v774_v53 }
 0x70e   : > { %v779_v56 = vmul.f32 %v778_v55, %v774_v53 }
 0x710   : > { %v780_v57 = vmul.f32 0.044715, %v779_v56 }
 0x712   : > { %v781_v58 = vadd.f32 %v780_v57, %v774_v53  ;;  %v925_v53 = vld [vmem:[#allocation5 + $0xa] sm:$0x1] }
 0x714   : > { %v782_v59 = vmul.f32 0.7978846, %v781_v58 }
 0x716   : > { %1886 = vtanh.f32 %v782_v59 }
 0x720   : > { %v1887_v60 = vpop.eup %1886 }
 0x721   : > { %v784_v62 = vadd.f32 1.0, %v1887_v60 }
 0x723   : > { %v785_v63 = vmul.f32 %v784_v62, %v777_v61 }
 0x725   : > { %v786_v2 = vadd.f32 %v785_v63, %v785_v63  ;;  %v974_v63 = vld [vmem:[#allocation2 + $0x118] sm:$0xff] }
 0x727   : > { %v787_v3 = vmul.f32 0.5, %v786_v2  ;;  %v975_v2 = vld [vmem:[#allocation2 + $0x120] sm:$0xff] }
 0x729   : > { %v790_v4 = vmul.f32 %v787_v3, %v787_v3  ;;  %v791_v5 = vrot.slane %v787_v3, 4 }
 0x72b   : > { %v792_v6 = vadd.f32 %v791_v5, %v787_v3  ;;  %v797_v7 = vrot.slane %v790_v4, 4 }
 0x72d   : > { %v798_v8 = vadd.f32 %v797_v7, %v790_v4  ;;  %v793_v9 = vrot.slane %v792_v6, 2  ;;  %v976_v4 = vld [vmem:[#allocation2 + $0x128] sm:$0xff] }
 0x72e   : > { %v1790_v5 = vpack.c.bf16 %v976_v4, %v975_v2 }
 0x72f   : > { %v799_v10 = vrot.slane %v798_v8, 2  ;;  %v794_v11 = vadd.f32 %v793_v9, %v792_v6  ;;  %v977_v9 = vld [vmem:[#allocation2 + $0x130] sm:$0xff] }
 0x731   : > { %v800_v12 = vadd.f32 %v799_v10, %v798_v8  ;;  %v795_v13 = vrot.slane %v794_v11, 1  ;;  %v978_v10 = vld [vmem:[#allocation2 + $0x138] sm:$0xff] }
 0x733   : > { %v796_v14 = vadd.f32 %v795_v13, %v794_v11  ;;  %v801_v15 = vrot.slane %v800_v12, 1  ;;  %v1793_v11 = vpack.c.bf16 %v978_v10, %v977_v9  ;;  %v980_v13 = vld [vmem:[#allocation2 + $0x148] sm:$0xff] }
 0x735   : > { %v802_v16 = vadd.f32 %v801_v15, %v800_v12  ;;  %v803_v17 = vmul.f32 0.125, %v796_v14  ;;  %v979_v12 = vld [vmem:[#allocation2 + $0x140] sm:$0xff] }
 0x736   : > { %v1796_v14 = vpack.c.bf16 %v980_v13, %v979_v12 }
 0x737   : > { %v804_v19 = vmul.f32 0.125, %v802_v16  ;;  %v805_v20 = vmul.f32 %v803_v17, %v803_v17 }
 0x739   : > { %v806_v21 = vsub.f32 %v804_v19, %v805_v20  ;;  %v926_v20 = vld [vmem:[#allocation5 + $0xb] sm:$0x1] }
 0x73b   : > { %v807_v22 = vadd.f32 1e-05, %v806_v21 }
 0x73d   : > { %1888 = vrsqrt.f32 %v807_v22 }
 0x747   : > { %v1889_v24 = vpop.eup %1888 }
 0x748   : > { %v809_v25 = vmul.f32 %v1889_v24, %v788_v23 }
 0x74a   : > { %v810_v27 = vmul.f32 %v809_v25, %v803_v17  ;;  %v815_v28 = vrot.slane %v809_v25, %v2229_v18 }
 0x74c   : > { %v811_v29 = vsub.f32 %v789_v26, %v810_v27  ;;  %v816_v30 = vmul.f32 %v815_v28, %v787_v3  ;;  %v1467_v28 = vld [vmem:[#allocation5 + $0xc] ss:$0 sm:$0xff] }
 0x74e   : > { %v820_v31 = vrot.slane %v811_v29, %v2229_v18 }
 0x750   : > { %v821_v32 = vadd.f32 %v820_v31, %v816_v30 }
 0x752   : > { %1668 = vmatmul.mubr.f32.vlgmr.msra.gmra.mrb[2].mxu0 %v821_v32 }
 0x825   : > { %v909_v34 = vpop.f32.mrb[2].mxu0 }
 0x826   : > { %v910_v35 = vadd.f32 %v1466_v33, %v909_v34  ;;  %v1669_v36 = vpop.f32.mrb[3].mxu0 }
 0x828   : > { %v914_v37 = vmul.f32 %v910_v35, %v910_v35  ;;  %v913_v46 = vmul.f32 0.5, %v910_v35 }
 0x82a   : > { %v915_v38 = vmul.f32 %v914_v37, %v910_v35 }
 0x82c   : > { %v916_v40 = vmul.f32 0.044715, %v915_v38 }
 0x82e   : > { %v917_v41 = vadd.f32 %v916_v40, %v910_v35 }
 0x830   : > { %v918_v42 = vmul.f32 0.7978846, %v917_v41 }
 0x832   : > { %1890 = vtanh.f32 %v918_v42 }
 0x83c   : > { %v1891_v45 = vpop.eup %1890 }
 0x83d   : > { %v920_v47 = vadd.f32 1.0, %v1891_v45 }
 0x83f   : > { %v921_v48 = vmul.f32 %v920_v47, %v913_v46  ;;  %v1069_v46 = vld [vmem:[#allocation5 + $0xd] sm:$0x1] }
 0x841   : > { %v922_v49 = vadd.f32 %v921_v48, %v2242_v44 }
 0x843   : > { %v923_v50 = vadd.f32 %v922_v49, %v2240_v43  ;;  %v973_v43 = vld [vmem:[#allocation2 + $0x110] sm:$0xff] }
 0x844   : > { %v1787_v3 = vpack.c.bf16 %v974_v63, %v973_v43  ;;  %v1121_v43 = vld [vmem:[#allocation2 + $0x168] sm:$0xff] }
 0x845   : > { %v924_v51 = vmul.f32 0.5, %v923_v50 }
 0x846   : > { %1788 = vmatpush3.bf16.msra.mxu1 %v1787_v3 }
 0x847   : > { %v927_v52 = vmul.f32 %v924_v51, %v924_v51  ;;  %1789 = vmatprep.subr.bf16.mxu1 %v2034_v0 }
 0x849   : > { %929 = vrot.lane.b32.xlu1 %v927_v52, %s2039_s9 }
 0x84a   : > { %1791 = vmatpush3.bf16.msra.mxu1 %v1790_v5 }
 0x84b   : > { %1792 = vmatprep.subr.bf16.mxu1 %v2034_v0 }
 0x84d   : > { %949 = vrot.lane.b32.xlu1 %v925_v53, %s2039_s9 }
 0x84e   : > { %1794 = vmatpush3.bf16.msra.mxu1 %v1793_v11 }
 0x84f   : > { %1795 = vmatprep.subr.bf16.mxu1 %v2034_v0 }
 0x852   : > { %1797 = vmatpush3.bf16.msra.mxu1 %v1796_v14  ;;  %v1469_v14 = vld [vmem:[#allocation5 + $0xf] ss:$0 sm:$0xff] }
 0x853   : > { %1798 = vmatprep.subr.bf16.mxu1 %v2034_v0 }
 0x8bb   : > { %v930_v54 = vpop.permute.xlu1 %929 }
 0x8bc   : > { %v932_v55 = vsel %vm505_vm3, %v924_v51, %v930_v54 }
 0x8bd   : > { %v933_v56 = vrot.slane %v932_v55, 4 }
 0x8bf   : > { %v934_v57 = vadd.f32 %v933_v56, %v932_v55  ;;  %v950_v15 = vpop.permute.xlu1 %949 }
 0x8c1   : > { %v935_v58 = vrot.slane %v934_v57, 2 }
 0x8c3   : > { %v936_v59 = vadd.f32 %v935_v58, %v934_v57 }
 0x8c5   : > { %v937_v60 = vrot.slane %v936_v59, 1 }
 0x8c7   : > { %v938_v61 = vadd.f32 %v937_v60, %v936_v59  ;;  %v1118_v60 = vld [vmem:[#allocation2 + $0x150] sm:$0xff] }
 0x8c9   : > { %v939_v62 = vmul.f32 0.125, %v938_v61  ;;  %v1119_v61 = vld [vmem:[#allocation2 + $0x158] sm:$0xff] }
 0x8cb   : > { %v940_v44 = vmul.f32 %v939_v62, %v939_v62 }
 0x8cd   : > { %942 = vrot.lane.b32.xlu0 %v940_v44, %s2039_s9  ;;  %v1120_v44 = vld [vmem:[#allocation2 + $0x160] sm:$0xff] }
 0x8ce   : > { %v1802_v63 = vpack.c.bf16 %v1121_v43, %v1120_v44 }
 0x93f   : > { %v943_v6 = vpop.permute.xlu0 %942 }
 0x940   : > { %v945_v7 = vsub.f32 %v939_v62, %v943_v6  ;;  %v1070_v6 = vld [vmem:[#allocation5 + $0xe] sm:$0x1] }
 0x942   : > { %v946_v8 = vadd.f32 1e-05, %v945_v7 }
 0x944   : > { %1892 = vrsqrt.f32 %v946_v8 }
 0x94e   : > { %v1893_v16 = vpop.eup %1892 }
 0x94f   : > { %v952_v17 = vmul.f32 %v1893_v16, %v950_v15 }
 0x951   : > { %v962_v19 = vrot.slane %v952_v17, %v2229_v18  ;;  %954 = vrot.lane.b32.xlu0 %v952_v17, %s2039_s9 }
 0x953   : > { %964 = vrot.lane.b32.xlu1 %v962_v19, %s2039_s9 }
 0x9c3   : > { %v955_v21 = vpop.permute.xlu0 %954 }
 0x9c4   : > { %v957_v22 = vmul.f32 %v955_v21, %v939_v62  ;;  %v1799_v62 = vpack.c.bf16 %v1119_v61, %v1118_v60 }
 0x9c5   : > { %v965_v23 = vpop.permute.xlu1 %964 }
 0x9c6   : > { %v958_v24 = vsub.f32 %v926_v20, %v957_v22  ;;  %v967_v26 = vmul.f32 %v965_v23, %v924_v51 }
 0x9c8   : > { %v971_v25 = vrot.slane %v958_v24, %v2229_v18 }
 0x9ca   : > { %v972_v27 = vadd.f32 %v971_v25, %v967_v26 }
 0x9cc   : > { %1687 = vmatmul.mubr.msk.f32.vlgmr.msra.gmra.mrb[8].mxu1 %vm505_vm3, %v972_v27 }
 0x9cd   : > { %1697 = vmatprep.mubr.msk.f32.mxu1 %vm2035_vm0, %v2036_v1  ;;  %1800 = vmatpush3.bf16.msra.mxu1 %v1799_v62  ;;  %v1471_v62 = vld [vmem:[#allocation5 + $0x12] ss:$0 sm:$0xff] }
 0x9ce   : > { %1801 = vmatprep.subr.bf16.mxu1 %v2034_v0 }
 0x9d1   : > { %1803 = vmatpush3.bf16.msra.mxu1 %v1802_v63 }
 0x9d2   : > { %1804 = vmatprep.subr.bf16.mxu1 %v2034_v0 }
 0xa9f   : > { %v1055_v29 = vpop.f32.mrb[8].mxu1 }
 0xaa0   : > { %v1056_v30 = vadd.f32 %v1467_v28, %v1055_v29  ;;  %v1688_v31 = vpop.f32.mrb[9].mxu1  ;;  %v1209_v29 = vld [vmem:[#allocation5 + $0x10] sm:$0x1] }
 0xaa2   : > { %v1060_v32 = vmul.f32 %v1056_v30, %v1056_v30  ;;  %v1059_v38 = vmul.f32 0.5, %v1056_v30 }
 0xaa4   : > { %v1061_v33 = vmul.f32 %v1060_v32, %v1056_v30 }
 0xaa6   : > { %v1062_v34 = vmul.f32 0.044715, %v1061_v33 }
 0xaa8   : > { %v1063_v35 = vadd.f32 %v1062_v34, %v1056_v30 }
 0xaaa   : > { %v1064_v36 = vmul.f32 0.7978846, %v1063_v35 }
 0xaac   : > { %1894 = vtanh.f32 %v1064_v36 }
 0xab6   : > { %v1895_v37 = vpop.eup %1894 }
 0xab7   : > { %v1066_v40 = vadd.f32 1.0, %v1895_v37 }
 0xab9   : > { %v1067_v41 = vmul.f32 %v1066_v40, %v1059_v38 }
 0xabb   : > { %v1068_v42 = vadd.f32 %v1067_v41, %v2219_v39 }
 0xabd   : > { %v1071_v45 = vmul.f32 %v1068_v42, %v1068_v42 }
 0xabf   : > { %1073 = vrot.lane.b32.xlu0 %v1071_v45, %s2037_s7 }
 0xac3   : > { %1094 = vrot.lane.b32.xlu0 %v1069_v46, %s2037_s7  ;;  %v1258_v46 = vld [vmem:[#allocation2 + $0x170] sm:$0xff] }
 0xb31   : > { %v1074_v47 = vpop.permute.xlu0 %1073 }
 0xb32   : > { %v1076_v48 = vsel %vm332_vm1, %v1068_v42, %v1074_v47  ;;  %v1259_v47 = vld [vmem:[#allocation2 + $0x178] sm:$0xff] }
 0xb33   : > { %v1077_v49 = vsel %vm505_vm3, %v1076_v48, 0.0  ;;  %v1805_v48 = vpack.c.bf16 %v1259_v47, %v1258_v46 }
 0xb34   : > { %v1078_v50 = vrot.slane %v1077_v49, 4 }
 0xb35   : > { %v1095_v2 = vpop.permute.xlu0 %1094 }
 0xb36   : > { %v1079_v51 = vadd.f32 %v1078_v50, %v1077_v49  ;;  %v1260_v49 = vld [vmem:[#allocation2 + $0x180] sm:$0xff]  ;;  %v1261_v50 = vld [vmem:[#allocation2 + $0x188] sm:$0xff] }
 0xb38   : > { %v1080_v52 = vrot.slane %v1079_v51, 2 }
 0xb3a   : > { %v1081_v53 = vadd.f32 %v1080_v52, %v1079_v51  ;;  %v1808_v51 = vpack.c.bf16 %v1261_v50, %v1260_v49 }
 0xb3c   : > { %v1082_v54 = vrot.slane %v1081_v53, 1 }
 0xb3e   : > { %v1083_v55 = vadd.f32 %v1082_v54, %v1081_v53 }
 0xb40   : > { %v1084_v56 = vmul.f32 0.125, %v1083_v55 }
 0xb42   : > { %v1085_v57 = vmul.f32 %v1084_v56, %v1084_v56 }
 0xb44   : > { %1087 = vrot.lane.b32.xlu1 %v1085_v57, %s2037_s7 }
 0xbb6   : > { %v1088_v39 = vpop.permute.xlu1 %1087 }
 0xbb7   : > { %v1090_v58 = vsub.f32 %v1084_v56, %v1088_v39 }
 0xbb9   : > { %v1091_v59 = vadd.f32 1e-05, %v1090_v58 }
 0xbbb   : > { %1896 = vrsqrt.f32 %v1091_v59 }
 0xbc5   : > { %v1897_v3 = vpop.eup %1896 }
 0xbc6   : > { %v1097_v4 = vmul.f32 %v1897_v3, %v1095_v2 }
 0xbc8   : > { %v1107_v5 = vrot.slane %v1097_v4, %v2229_v18  ;;  %1099 = vrot.lane.b32.xlu1 %v1097_v4, %s2038_s8 }
 0xbca   : > { %1109 = vrot.lane.b32.xlu0 %v1107_v5, %s2038_s8 }
 0xc3a   : > { %v1100_v7 = vpop.permute.xlu1 %1099 }
 0xc3b   : > { %v1102_v8 = vmul.f32 %v1100_v7, %v1084_v56  ;;  %v1210_v56 = vld [vmem:[#allocation5 + $0x11] sm:$0x1] }
 0xc3c   : > { %v1110_v9 = vpop.permute.xlu0 %1109 }
 0xc3d   : > { %v1103_v10 = vsub.f32 %v1070_v6, %v1102_v8  ;;  %v1112_v12 = vmul.f32 %v1110_v9, %v1068_v42 }
 0xc3f   : > { %v1116_v11 = vrot.slane %v1103_v10, %v2229_v18 }
 0xc41   : > { %v1117_v13 = vadd.f32 %v1116_v11, %v1112_v12 }
 0xc43   : > { %1698 = vmatmul.mubr.msk.f32.vlgmr.msra.gmra.mrb[10].mxu1 %vm332_vm1, %v1117_v13 }
 0xc44   : > { %1708 = vmatprep.mubr.msk.f32.mxu1 %vm2035_vm0, %v2036_v1  ;;  %1806 = vmatpush3.bf16.msra.mxu1 %v1805_v48 }
 0xc45   : > { %1807 = vmatprep.subr.bf16.mxu1 %v2034_v0 }
 0xc48   : > { %1809 = vmatpush3.bf16.msra.mxu1 %v1808_v51 }
 0xd16   : > { %v1196_v15 = vpop.f32.mrb[10].mxu1 }
 0xd17   : > { %v1197_v16 = vadd.f32 %v1469_v14, %v1196_v15  ;;  %v1699_v17 = vpop.f32.mrb[11].mxu1 }
 0xd19   : > { %v1201_v19 = vmul.f32 %v1197_v16, %v1197_v16  ;;  %v1200_v25 = vmul.f32 0.5, %v1197_v16 }
 0xd1b   : > { %v1202_v20 = vmul.f32 %v1201_v19, %v1197_v16 }
 0xd1d   : > { %v1203_v21 = vmul.f32 0.044715, %v1202_v20 }
 0xd1f   : > { %v1204_v22 = vadd.f32 %v1203_v21, %v1197_v16 }
 0xd21   : > { %v1205_v23 = vmul.f32 0.7978846, %v1204_v22 }
 0xd23   : > { %1898 = vtanh.f32 %v1205_v23 }
 0xd2d   : > { %v1899_v24 = vpop.eup %1898 }
 0xd2e   : > { %v1207_v26 = vadd.f32 1.0, %v1899_v24 }
 0xd30   : > { %v1208_v27 = vmul.f32 %v1207_v26, %v1200_v25 }
 0xd32   : > { %v1211_v28 = vmul.f32 %v1208_v27, %v1208_v27 }
 0xd34   : > { %1213 = vrot.lane.b32.xlu1 %v1211_v28, %s2037_s7 }
 0xd38   : > { %1234 = vrot.lane.b32.xlu1 %v1209_v29, %s2037_s7 }
 0xda6   : > { %v1214_v1 = vpop.permute.xlu1 %1213 }
 0xda7   : > { %v1216_v30 = vsel %vm332_vm1, %v1208_v27, %v1214_v1 }
 0xda8   : > { %v1217_v31 = vsel %vm505_vm3, %v1216_v30, 0.0 }
 0xda9   : > { %v1218_v32 = vrot.slane %v1217_v31, 4 }
 0xdaa   : > { %v1235_v52 = vpop.permute.xlu1 %1234 }
 0xdab   : > { %v1219_v33 = vadd.f32 %v1218_v32, %v1217_v31 }
 0xdad   : > { %v1220_v34 = vrot.slane %v1219_v33, 2 }
 0xdaf   : > { %v1221_v35 = vadd.f32 %v1220_v34, %v1219_v33 }
 0xdb1   : > { %v1222_v36 = vrot.slane %v1221_v35, 1 }
 0xdb3   : > { %v1223_v37 = vadd.f32 %v1222_v36, %v1221_v35 }
 0xdb5   : > { %v1224_v38 = vmul.f32 0.125, %v1223_v37 }
 0xdb7   : > { %v1225_v40 = vmul.f32 %v1224_v38, %v1224_v38 }
 0xdb9   : > { %1227 = vrot.lane.b32.xlu0 %v1225_v40, %s2037_s7 }
 0xe2b   : > { %v1228_v41 = vpop.permute.xlu0 %1227 }
 0xe2c   : > { %v1230_v42 = vsub.f32 %v1224_v38, %v1228_v41 }
 0xe2e   : > { %v1231_v45 = vadd.f32 1e-05, %v1230_v42 }
 0xe30   : > { %1900 = vrsqrt.f32 %v1231_v45 }
 0xe3a   : > { %v1901_v53 = vpop.eup %1900 }
 0xe3b   : > { %v1237_v54 = vmul.f32 %v1901_v53, %v1235_v52 }
 0xe3d   : > { %v1247_v55 = vrot.slane %v1237_v54, %v2229_v18  ;;  %1239 = vrot.lane.b32.xlu0 %v1237_v54, %s2038_s8 }
 0xe3f   : > { %1249 = vrot.lane.b32.xlu1 %v1247_v55, %s2038_s8 }
 0xeaf   : > { %v1240_v57 = vpop.permute.xlu0 %1239 }
 0xeb0   : > { %v1242_v39 = vmul.f32 %v1240_v57, %v1224_v38 }
 0xeb1   : > { %v1250_v58 = vpop.permute.xlu1 %1249 }
 0xeb2   : > { %v1243_v0 = vsub.f32 %v1210_v56, %v1242_v39  ;;  %v1252_v60 = vmul.f32 %v1250_v58, %v1208_v27 }
 0xeb4   : > { %v1256_v59 = vrot.slane %v1243_v0, %v2229_v18 }
 0xeb6   : > { %v1257_v61 = vadd.f32 %v1256_v59, %v1252_v60 }
 0xeb8   : > { %1709 = vmatmul.mubr.msk.f32.vlgmr.msra.gmra.mrb[12].mxu1 %vm332_vm1, %v1257_v61 }
 0xf8b   : > { %v1336_v44 = vpop.f32.mrb[12].mxu1 }
 0xf8c   : > { %v1337_v43 = vadd.f32 %v1471_v62, %v1336_v44  ;;  %v1710_v63 = vpop.f32.mrb[13].mxu1 }
 0xf8e   : > { %1340 = vst.msk [vmem:[%s231_s29] sm:$0xff] %vm413_vm2, %v1337_v43 }
 0xf8f   : > { %1971 = shalt.err (!%p1968_p11)
}
 0xf90   : > { %s1972_s28 = scalar_lea.hbm %s2318_s30, 128  ;;  %s1976_s8 = scalar_lea.hbm %s2365_s4, 512 }
 0xf91   : > { %p1973_p13 = scmp.ne.s32.totalorder %s2318_s30, %s1972_s28  ;;  %p1977_p6 = scmp.lt.u32.totalorder %s2318_s30, %s2365_s4 }
 0xf92   : > { %p1978_p9 = scmp.lt.u32.totalorder %s1976_s8, %s1972_s28  ;;  %p1980_p10 = scmp.lt.u32.totalorder %s1972_s28, %s2318_s30 }
 0xf93   : > { %p1974_p5 = pnand %p1973_p13, %p2378_p1 }
 0xf94   : > { %p1979_p12 = por %p1978_p9, %p1977_p6 }
 0xf95   : > { %p1975_p0 = pneg %p1974_p5 }
 0xf96   : > { %p1981_p2 = por %p1980_p10, %p1979_p12 }
 0xf98   : > { %p1982_p3 = pnand %p1981_p2, %p1975_p0 }
 0xf9a   : > { %1985 = shalt.err (!%p1982_p3)
}
 0xf9b   : > { %1818 = dma.vmem_to_hbm [thread:$0]  (%p2378_p1), %s2320_s13, 128, %s2318_s30, %s1342_s6  }
 0xf9c PF: > { %p1835_p4 = scmp.ge.s32.totalorder %s2028_s18, 2  ;;  %s1367_s11 = sand.u32 1, %s2016_s15  }
 0xf9d   : > { %p2379_p7 = scmp.ne.s32.totalorder %s2370_s26, 0  ;;  %s1368_s12 = scalar_lea.sflag [#allocation4], %s1367_s11 }
 0xf9f   : > { %p1828_p8 = pnand %p1835_p4, %p2379_p7 }
 0xfa1   : > { %2011 = dma.done.wait (!%p1828_p8), %s1368_s12, 128  }
 0xfa2   : > { %2013 = vsyncadd (!%p1828_p8), %s1368_s12, 4294967168  ;;  %p16_p11 = scmp.ge.s32.totalorder %s2091_s21, 6   ;;  %s2380_s15 = smov %s2020_s16 }
 0xfa3   : > { %s2381_s16 = smov %s2024_s17  ;;  %s2382_s17 = smov %s2102_s24 }
 0xfa4   : > { %s2383_s18 = smov %s2091_s21  ;;  %18 = sbr.rel (!%p16_p11) target bundleno = 5 (0x5), region = 83 }
 0xfab   :  { %1373 = vsyncpa [#allocation3], 1 }
 0xfac   :  { %1375 = vsyncpa [#allocation3 + $0x1], 1 }
 0xfad   :  { %1376 = vsyncpa [#allocation6], 1 }
 0xfae   :  { %1377 = vsyncpa [#allocation4], 1 }
 0xfaf   :  { %1379 = vsyncpa [#allocation4 + $0x1], 1 }

</bundles_post_ra>
